<compile_context>
chip_gen: v5e
topology: v5e:2x2
jax: 0.10.0
libtpu: 0.0.40
codegen_flags: <defaults>
</compile_context>

<pallas_src>
import functools
import math

import jax
import jax.numpy as jnp
from jax.experimental import pallas as pl
from jax.experimental.pallas import tpu as pltpu

LANE = 128


# ----------------------------------------------------------------------------- #
# Kernel: fused depthwise(KxK)+pointwise(1x1) conv + bias + ReLU for one
# (batch block, output-channel tile, row strip) grid step.
#   x_ref  : (Bt, H, W, C)        unpadded input block (resident per batch block)
#   w_ref  : (K*K*C, CO_TILE)     bf16 folded dw*pw weights, tap-major rows
#   b_ref  : (1, CO_TILE)         f32 folded bias
#   out_ref: (Bt, Sr*W, CO_TILE)  lane-dense output block for this strip/co tile
#   xp_ref : (Bt, Hp, Wp, C)      bf16 zero-padded image (persistent scratch)
#   acc_ref: (Sr*W, CO_TILE)      f32 accumulator
# ----------------------------------------------------------------------------- #
def _fused_dsconv_kernel(x_ref, w_ref, b_ref, out_ref, xp_ref, acc_ref, *,
                         H, W, K, pad, Sr, taps_per_mm):
    Bt = x_ref.shape[0]
    C = x_ref.shape[-1]
    HWs = Sr * W
    co = pl.program_id(1)
    s = pl.program_id(2)

    # Build the padded bf16 image once per batch block; the scratch persists across
    # the co/strip sub-grid and the border is never overwritten afterwards.
    @pl.when((co == 0) & (s == 0))
    def _():
        xp_ref[...] = jnp.zeros_like(xp_ref)
        xp_ref[:, pad:pad + H, pad:pad + W, :] = x_ref[...].astype(xp_ref.dtype)

    r0 = pl.multiple_of(s * Sr, Sr)  # first padded-image row touched by this strip
    KK = K * K
    n_groups = (KK + taps_per_mm - 1) // taps_per_mm

    for bi in range(Bt):
        acc_ref[...] = jnp.zeros_like(acc_ref)
        # Tap-accumulated matmuls: no materialized (HW, K*K*C) im2col buffer.
        for g in range(n_groups):
            t0 = g * taps_per_mm
            t1 = min(KK, t0 + taps_per_mm)
            taps = []
            for t in range(t0, t1):
                di, dj = t // K, t % K
                tap = xp_ref[bi, pl.ds(r0 + di, Sr), pl.ds(dj, W), :]
                taps.append(tap.reshape(HWs, C))
            lhs = taps[0] if len(taps) == 1 else jnp.concatenate(taps, axis=-1)
            acc_ref[...] += jnp.dot(lhs, w_ref[t0 * C:t1 * C, :],
                                    preferred_element_type=jnp.float32)
        y = acc_ref[...] + b_ref[0].astype(jnp.float32)
        y = jnp.maximum(y, 0.0)  # TODO(synk): activation assumed ReLU.
        out_ref[bi] = y.astype(out_ref.dtype)


# ----------------------------------------------------------------------------- #
# Host-side helpers: VMEM budget, tile selection, weight folding.
# ----------------------------------------------------------------------------- #
def _vmem_capacity_bytes():
    try:
        info = pltpu.get_tpu_info()
        cap = getattr(info, "vmem_capacity_bytes", None)
        if cap:
            return int(cap)
    except Exception:
        pass
    return 64 << 20  # conservative default (v7x per-TensorCore VMEM)


def _choose_co_tile(inner_p, max_tile=512):
    """Largest multiple of 128 dividing inner_p (itself a multiple of 128), <= max_tile."""
    best = LANE
    t = LANE
    while t <= min(inner_p, max_tile):
        if inner_p % t == 0:
            best = t
        t += LANE
    return best


def fused_dsconv_act(x_img, w_eff, b_eff, *, kernel_size, pad, inner_p,
                     batch_tile=None, row_strips=None, co_tile=None):
    """x_img (B,H,W,C) -> (B, H*W, CoutTot) via one fused-conv Pallas call."""
    B, H, W, C = x_img.shape
    K = kernel_size
    KKC, cout_total = w_eff.shape
    assert KKC == K * K * C
    Hp, Wp = H + 2 * pad, W + 2 * pad
    HW = H * W

    if co_tile is None:
        co_tile = _choose_co_tile(inner_p)
    assert cout_total % co_tile == 0 and co_tile % LANE == 0
    n_co = cout_total // co_tile

    # Group taps so the matmul contraction depth stays near the MXU depth.
    taps_per_mm = max(1, min(K * K, -(-256 // C)))

    in_bytes = x_img.dtype.itemsize
    out_bytes = in_bytes

    def footprint(bt, sr):
        hws = sr * W
        f = 2 * bt * H * W * C * in_bytes          # input block (double-buffered)
        f += bt * Hp * Wp * C * 2                  # bf16 padded-image scratch
        f += 2 * KKC * co_tile * 2                 # bf16 weight tile (double-buffered)
        f += 2 * co_tile * 4                       # bias tile
        f += hws * co_tile * 4                     # f32 accumulator
        f += 2 * bt * hws * co_tile * out_bytes    # output block (double-buffered)
        f += hws * taps_per_mm * C * 2             # grouped-tap LHS temporary
        return f

    budget = int(_vmem_capacity_bytes() * 0.7)

    def _valid_sr(sr):
        return H % sr == 0 and ((sr * W) % 8 == 0 or sr == H)

    if batch_tile is None or row_strips is None:
        sr_cands = [d for d in range(H, 0, -1) if _valid_sr(d)]
        bt_cands = [d for d in range(B, 0, -1) if B % d == 0]
        Bt, Sr = 1, sr_cands[-1]
        found = False
        for sr in sr_cands:              # prefer full-height strips
            for bt in bt_cands:          # then the largest batch tile that fits
                if footprint(bt, sr) <= budget:
                    Bt, Sr, found = bt, sr, True
                    break
            if found:
                break
        if batch_tile is not None:
            Bt = batch_tile
        if row_strips is not None:
            Sr = H // row_strips
    else:
        Bt, Sr = batch_tile, H // row_strips
    assert B % Bt == 0 and _valid_sr(Sr)

    # Keep at least 2 grid steps so a second TensorCore (v7x) is not idle.
    n_b, n_s = B // Bt, H // Sr
    if n_b * n_s * n_co < 2:
        if Bt > 1:
            smaller = [d for d in range(Bt - 1, 0, -1) if B % d == 0]
            if smaller:
                Bt = smaller[0]
        else:
            smaller = [d for d in range(Sr - 1, 0, -1) if _valid_sr(d)]
            if smaller:
                Sr = smaller[0]
        n_b, n_s = B // Bt, H // Sr

    HWs = Sr * W
    cap = _vmem_capacity_bytes()
    vmem_limit = int(min(cap - (4 << 20),
                         max(2 * footprint(Bt, Sr) + (8 << 20), 32 << 20)))

    kern = functools.partial(_fused_dsconv_kernel, H=H, W=W, K=K, pad=pad,
                             Sr=Sr, taps_per_mm=taps_per_mm)
    return pl.pallas_call(
        kern,
        out_shape=jax.ShapeDtypeStruct((B, HW, cout_total), x_img.dtype),
        grid_spec=pltpu.PrefetchScalarGridSpec(
            num_scalar_prefetch=0,
            grid=(n_b, n_co, n_s),  # co before strips: weight tile stays resident
            in_specs=[
                pl.BlockSpec((Bt, H, W, C), lambda b, co, s: (b, 0, 0, 0)),
                pl.BlockSpec((KKC, co_tile), lambda b, co, s: (0, co)),
                pl.BlockSpec((1, co_tile), lambda b, co, s: (0, co)),
            ],
            out_specs=pl.BlockSpec((Bt, HWs, co_tile), lambda b, co, s: (b, s, co)),
            scratch_shapes=[
                pltpu.VMEM((Bt, Hp, Wp, C), jnp.bfloat16),   # padded image
                pltpu.VMEM((HWs, co_tile), jnp.float32),     # accumulator
            ],
        ),
        compiler_params=pltpu.CompilerParams(
            dimension_semantics=("parallel", "arbitrary", "arbitrary"),
            vmem_limit_bytes=vmem_limit),
    )(x_img, w_eff, b_eff.reshape(1, -1))


def _fold_params(param_list, channels, kernel_size):
    """Fold each (depthwise, pointwise) pair into one matmul weight (exact: no
    nonlinearity between the two convs), pad each projection's output channels to
    a 128 multiple (lane-dense stores + aligned host slices), concatenate the
    projections along output channels.  Fold in f32, cast weights to bf16 once."""
    K, C = kernel_size, channels
    couts = [int(w_pw.shape[1]) for (_, _, w_pw, _) in param_list]
    inner_p = max(-(-c // LANE) * LANE for c in couts)
    w_blocks, b_blocks = [], []
    for (w_dw, b_dw, w_pw, b_pw) in param_list:
        cout = int(w_pw.shape[1])
        w_eff = (w_dw.astype(jnp.float32).reshape(K * K, C, 1)
                 * w_pw.astype(jnp.float32).reshape(1, C, cout)).reshape(K * K * C, cout)
        b_eff = b_dw.astype(jnp.float32) @ w_pw.astype(jnp.float32) + b_pw.astype(jnp.float32)
        w_blocks.append(jnp.pad(w_eff, ((0, 0), (0, inner_p - cout))))
        b_blocks.append(jnp.pad(b_eff, ((0, inner_p - cout),)))
    w = jnp.concatenate(w_blocks, axis=1).astype(jnp.bfloat16)
    b = jnp.concatenate(b_blocks, axis=0)  # stays f32 (added post-matmul)
    return w, b, couts, inner_p


# ----------------------------------------------------------------------------- #
# ConvProjection forward: (B, N, C) -> q, k, v each (B, heads, N, head_channels)
# ----------------------------------------------------------------------------- #
def conv_projection_forward(x, params, *, heads, kernel_size=3, q_stride=1,
                            k_stride=1, v_stride=1, attn_kv=None, tiling=None):
    assert q_stride == 1 and k_stride == 1 and v_stride == 1, \
        "only the default stride=1 path is implemented"
    B, N, C = x.shape
    L = int(math.sqrt(N))
    assert L * L == N, "token count must be a perfect square"
    pad = (kernel_size - q_stride) // 2
    x_img = x.reshape(B, L, L, C)  # 'b (l w) c -> b l w c'
    tiling = dict(tiling or {})

    def to_heads(t):
        b, n, inner = t.shape
        d = inner // heads
        # 'b (h d) l w -> b h (l w) d' (channel index = h*d + d_idx)
        return t.reshape(b, n, heads, d).transpose(0, 2, 1, 3)

    if attn_kv is None:
        # Fully fused path: one launch, one HBM read of x, q|k|v share the matmuls.
        w, b, couts, inner_p = _fold_params(
            [params["q"], params["k"], params["v"]], C, kernel_size)
        y = fused_dsconv_act(x_img, w, b, kernel_size=kernel_size, pad=pad,
                             inner_p=inner_p, **tiling)
        q = y[:, :, 0 * inner_p:0 * inner_p + couts[0]]
        k = y[:, :, 1 * inner_p:1 * inner_p + couts[1]]
        v = y[:, :, 2 * inner_p:2 * inner_p + couts[2]]
    else:
        kv_img = attn_kv.reshape(B, L, L, C)
        wq, bq, cq, ipq = _fold_params([params["q"]], C, kernel_size)
        wkv, bkv, ckv, ipkv = _fold_params([params["k"], params["v"]], C, kernel_size)
        q = fused_dsconv_act(x_img, wq, bq, kernel_size=kernel_size, pad=pad,
                             inner_p=ipq, **tiling)[:, :, :cq[0]]
        ykv = fused_dsconv_act(kv_img, wkv, bkv, kernel_size=kernel_size, pad=pad,
                               inner_p=ipkv, **tiling)
        k = ykv[:, :, 0 * ipkv:0 * ipkv + ckv[0]]
        v = ykv[:, :, 1 * ipkv:1 * ipkv + ckv[1]]

    # TODO(synk): the head split/transpose stays in XLA; an in-kernel head-major
    #             layout would force sub-128-lane (masked) output stores.
    return to_heads(q), to_heads(k), to_heads(v)


# ----------------------------------------------------------------------------- #
# Plain-JAX reference (lax.conv, highest precision) for verification.
# ----------------------------------------------------------------------------- #
def _ref_dsconv_act(x_nhwc, w_dw, b_dw, w_pw, b_pw, *, pad):
    B, H, W, C = x_nhwc.shape
    K = w_dw.shape[0]
    Cout = w_pw.shape[1]
    hp = jax.lax.Precision.HIGHEST
    dw = jax.lax.conv_general_dilated(
        x_nhwc, w_dw.reshape(K, K, 1, C), (1, 1), [(pad, pad), (pad, pad)],
        dimension_numbers=("NHWC", "HWIO", "NHWC"), feature_group_count=C,
        precision=hp) + b_dw
    pw = jax.lax.conv_general_dilated(
        dw, w_pw.reshape(1, 1, C, Cout), (1, 1), "VALID",
        dimension_numbers=("NHWC", "HWIO", "NHWC"), precision=hp) + b_pw
    return jnp.maximum(pw, 0.0).reshape(B, H * W, Cout)


def _make_params(key, channels, inner, kernel_size):
    def proj_params(k):
        k1, k2, k3, k4 = jax.random.split(k, 4)
        w_dw = jax.random.normal(k1, (kernel_size, kernel_size, channels), jnp.float32) * 0.2
        b_dw = jax.random.normal(k2, (channels,), jnp.float32) * 0.05
        w_pw = jax.random.normal(k3, (channels, inner), jnp.float32) * (1.0 / math.sqrt(channels))
        b_pw = jax.random.normal(k4, (inner,), jnp.float32) * 0.05
        return (w_dw, b_dw, w_pw, b_pw)

    kq, kk, kv = jax.random.split(key, 3)
    return {"q": proj_params(kq), "k": proj_params(kk), "v": proj_params(kv)}


if __name__ == "__main__":
    # Small config: channels=8, heads=2, head_channels=8 -> inner=16, tokens N=64 (8x8).
    B, N, C = 2, 64, 8
    heads, head_channels, kernel_size = 2, 8, 3
    inner = heads * head_channels

    key = jax.random.PRNGKey(0)
    kx, kkv, kp = jax.random.split(key, 3)
    x = jax.random.normal(kx, (B, N, C), jnp.float32)
    params = _make_params(kp, C, inner, kernel_size)

    L = int(math.sqrt(N))
    pad = (kernel_size - 1) // 2

    def check(q, k, v, x_q, x_kv):
        for name, out, src in (("q", q, x_q), ("k", k, x_kv), ("v", v, x_kv)):
            assert out.shape == (B, heads, N, head_channels)
            ref_flat = _ref_dsconv_act(src.reshape(B, L, L, C), *params[name], pad=pad)
            ref = ref_flat.reshape(B, N, heads, head_channels).transpose(0, 2, 1, 3)
            err = float(jnp.max(jnp.abs(out - ref)))
            assert err < 2e-2, f"{name} mismatch: {err}"

    # 1) Default (auto) tiling.
    q, k, v = conv_projection_forward(x, params, heads=heads, kernel_size=kernel_size)
    jax.block_until_ready((q, k, v))
    check(q, k, v, x, x)

    # 2) Forced multi-step tiling (exercises the batch / co / strip grid axes).
    q2, k2, v2 = conv_projection_forward(
        x, params, heads=heads, kernel_size=kernel_size,
        tiling=dict(batch_tile=1, row_strips=2))
    jax.block_until_ready((q2, k2, v2))
    check(q2, k2, v2, x, x)

    # 3) Separate attn_kv path.
    x_kv = jax.random.normal(kkv, (B, N, C), jnp.float32)
    q3, k3, v3 = conv_projection_forward(
        x, params, heads=heads, kernel_size=kernel_size, attn_kv=x_kv)
    jax.block_until_ready((q3, k3, v3))
    check(q3, k3, v3, x, x_kv)

    print("KERNEL_OK")
</pallas_src>

<mosaic_0001>
module attributes {stable_mosaic.version = 11 : i64} {
  func.func @_fused_dsconv_kernel(%arg0: i32, %arg1: i32, %arg2: i32, %arg3: memref<2x8x8x8xf32, #tpu.memory_space<vmem>>, %arg4: memref<72x128xbf16, #tpu.memory_space<vmem>>, %arg5: memref<1x128xf32, #tpu.memory_space<vmem>>, %arg6: memref<2x64x128xf32, #tpu.memory_space<vmem>>, %arg7: memref<2x10x10x8xbf16, #tpu.memory_space<vmem>>, %arg8: memref<64x128xf32, #tpu.memory_space<vmem>>) attributes {dimension_semantics = [#tpu.dimension_semantics<parallel>, #tpu.dimension_semantics<arbitrary>, #tpu.dimension_semantics<arbitrary>], iteration_bounds = array<i64: 1, 3, 1>, scalar_prefetch = 0 : i64, scratch_operands = 2 : i64, tpu.core_type = #tpu.core_type<tc>, window_params = [{transform_indices = @transform_0, window_bounds = array<i64: 2, 8, 8, 8>}, {transform_indices = @transform_1, window_bounds = array<i64: 72, 128>}, {transform_indices = @transform_2, window_bounds = array<i64: 1, 128>}, {transform_indices = @transform_3, window_bounds = array<i64: 2, 64, 128>}]} {
    %c0_i32 = arith.constant 0 : i32
    %0 = arith.cmpi eq, %arg1, %c0_i32 : i32
    %c0_i32_0 = arith.constant 0 : i32
    %1 = arith.cmpi eq, %arg2, %c0_i32_0 : i32
    %2 = arith.andi %0, %1 : i1
    %3 = arith.extui %2 : i1 to i32
    %c0_i32_1 = arith.constant 0 : i32
    %4 = arith.cmpi ne, %3, %c0_i32_1 : i32
    scf.if %4 {
      %cst_104 = arith.constant 0.000000e+00 : bf16
      %135 = vector.broadcast %cst_104 : bf16 to vector<2x10x10x8xbf16>
      %c0_105 = arith.constant 0 : index
      %c0_106 = arith.constant 0 : index
      %c0_107 = arith.constant 0 : index
      %c0_108 = arith.constant 0 : index
      %136 = vector.load %arg7[%c0_105, %c0_106, %c0_107, %c0_108] : memref<2x10x10x8xbf16, #tpu.memory_space<vmem>>, vector<2x10x10x8xbf16>
      tpu.vector_store %arg7[%c0_105, %c0_106, %c0_107, %c0_108], %135 {strides = array<i32>} : memref<2x10x10x8xbf16, #tpu.memory_space<vmem>>, vector<2x10x10x8xbf16>,
      %c0_109 = arith.constant 0 : index
      %c0_110 = arith.constant 0 : index
      %c0_111 = arith.constant 0 : index
      %c0_112 = arith.constant 0 : index
      %137 = vector.load %arg3[%c0_109, %c0_110, %c0_111, %c0_112] : memref<2x8x8x8xf32, #tpu.memory_space<vmem>>, vector<2x8x8x8xf32>
      %138 = arith.truncf %137 : vector<2x8x8x8xf32> to vector<2x8x8x8xbf16>
      %c0_113 = arith.constant 0 : index
      %c1_114 = arith.constant 1 : index
      %c1_115 = arith.constant 1 : index
      %c0_116 = arith.constant 0 : index
      %139 = vector.load %arg7[%c0_113, %c1_114, %c1_115, %c0_116] : memref<2x10x10x8xbf16, #tpu.memory_space<vmem>>, vector<2x8x8x8xbf16>
      tpu.vector_store %arg7[%c0_113, %c1_114, %c1_115, %c0_116], %138 {strides = array<i32>} : memref<2x10x10x8xbf16, #tpu.memory_space<vmem>>, vector<2x8x8x8xbf16>,
    } else {
    }
    %c8_i32 = arith.constant 8 : i32
    %5 = arith.muli %arg2, %c8_i32 : i32
    %6 = tpu.assume_multiple %5, 8 : i32
    %cst = arith.constant 0.000000e+00 : f32
    %7 = vector.broadcast %cst : f32 to vector<64x128xf32>
    %c0 = arith.constant 0 : index
    %c0_2 = arith.constant 0 : index
    %8 = vector.load %arg8[%c0, %c0_2] : memref<64x128xf32, #tpu.memory_space<vmem>>, vector<64x128xf32>
    tpu.vector_store %arg8[%c0, %c0_2], %7 {strides = array<i32>} : memref<64x128xf32, #tpu.memory_space<vmem>>, vector<64x128xf32>,
    %c0_i32_3 = arith.constant 0 : i32
    %9 = arith.addi %6, %c0_i32_3 : i32
    %c0_4 = arith.constant 0 : index
    %10 = arith.index_cast %9 : i32 to index
    %c0_5 = arith.constant 0 : index
    %c0_6 = arith.constant 0 : index
    %11 = vector.load %arg7[%c0_4, %10, %c0_5, %c0_6] : memref<2x10x10x8xbf16, #tpu.memory_space<vmem>>, vector<1x8x8x8xbf16>
    %12 = vector.shape_cast %11 : vector<1x8x8x8xbf16> to vector<8x8x8xbf16>
    %13 = vector.shape_cast %12 : vector<8x8x8xbf16> to vector<64x8xbf16>
    %c0_i32_7 = arith.constant 0 : i32
    %14 = arith.addi %6, %c0_i32_7 : i32
    %c0_8 = arith.constant 0 : index
    %15 = arith.index_cast %14 : i32 to index
    %c1 = arith.constant 1 : index
    %c0_9 = arith.constant 0 : index
    %16 = vector.load %arg7[%c0_8, %15, %c1, %c0_9] : memref<2x10x10x8xbf16, #tpu.memory_space<vmem>>, vector<1x8x8x8xbf16>
    %17 = vector.shape_cast %16 : vector<1x8x8x8xbf16> to vector<8x8x8xbf16>
    %18 = vector.shape_cast %17 : vector<8x8x8xbf16> to vector<64x8xbf16>
    %c0_i32_10 = arith.constant 0 : i32
    %19 = arith.addi %6, %c0_i32_10 : i32
    %c0_11 = arith.constant 0 : index
    %20 = arith.index_cast %19 : i32 to index
    %c2 = arith.constant 2 : index
    %c0_12 = arith.constant 0 : index
    %21 = vector.load %arg7[%c0_11, %20, %c2, %c0_12] : memref<2x10x10x8xbf16, #tpu.memory_space<vmem>>, vector<1x8x8x8xbf16>
    %22 = vector.shape_cast %21 : vector<1x8x8x8xbf16> to vector<8x8x8xbf16>
    %23 = vector.shape_cast %22 : vector<8x8x8xbf16> to vector<64x8xbf16>
    %c1_i32 = arith.constant 1 : i32
    %24 = arith.addi %6, %c1_i32 : i32
    %c0_13 = arith.constant 0 : index
    %25 = arith.index_cast %24 : i32 to index
    %c0_14 = arith.constant 0 : index
    %c0_15 = arith.constant 0 : index
    %26 = vector.load %arg7[%c0_13, %25, %c0_14, %c0_15] : memref<2x10x10x8xbf16, #tpu.memory_space<vmem>>, vector<1x8x8x8xbf16>
    %27 = vector.shape_cast %26 : vector<1x8x8x8xbf16> to vector<8x8x8xbf16>
    %28 = vector.shape_cast %27 : vector<8x8x8xbf16> to vector<64x8xbf16>
    %c1_i32_16 = arith.constant 1 : i32
    %29 = arith.addi %6, %c1_i32_16 : i32
    %c0_17 = arith.constant 0 : index
    %30 = arith.index_cast %29 : i32 to index
    %c1_18 = arith.constant 1 : index
    %c0_19 = arith.constant 0 : index
    %31 = vector.load %arg7[%c0_17, %30, %c1_18, %c0_19] : memref<2x10x10x8xbf16, #tpu.memory_space<vmem>>, vector<1x8x8x8xbf16>
    %32 = vector.shape_cast %31 : vector<1x8x8x8xbf16> to vector<8x8x8xbf16>
    %33 = vector.shape_cast %32 : vector<8x8x8xbf16> to vector<64x8xbf16>
    %c1_i32_20 = arith.constant 1 : i32
    %34 = arith.addi %6, %c1_i32_20 : i32
    %c0_21 = arith.constant 0 : index
    %35 = arith.index_cast %34 : i32 to index
    %c2_22 = arith.constant 2 : index
    %c0_23 = arith.constant 0 : index
    %36 = vector.load %arg7[%c0_21, %35, %c2_22, %c0_23] : memref<2x10x10x8xbf16, #tpu.memory_space<vmem>>, vector<1x8x8x8xbf16>
    %37 = vector.shape_cast %36 : vector<1x8x8x8xbf16> to vector<8x8x8xbf16>
    %38 = vector.shape_cast %37 : vector<8x8x8xbf16> to vector<64x8xbf16>
    %c2_i32 = arith.constant 2 : i32
    %39 = arith.addi %6, %c2_i32 : i32
    %c0_24 = arith.constant 0 : index
    %40 = arith.index_cast %39 : i32 to index
    %c0_25 = arith.constant 0 : index
    %c0_26 = arith.constant 0 : index
    %41 = vector.load %arg7[%c0_24, %40, %c0_25, %c0_26] : memref<2x10x10x8xbf16, #tpu.memory_space<vmem>>, vector<1x8x8x8xbf16>
    %42 = vector.shape_cast %41 : vector<1x8x8x8xbf16> to vector<8x8x8xbf16>
    %43 = vector.shape_cast %42 : vector<8x8x8xbf16> to vector<64x8xbf16>
    %c2_i32_27 = arith.constant 2 : i32
    %44 = arith.addi %6, %c2_i32_27 : i32
    %c0_28 = arith.constant 0 : index
    %45 = arith.index_cast %44 : i32 to index
    %c1_29 = arith.constant 1 : index
    %c0_30 = arith.constant 0 : index
    %46 = vector.load %arg7[%c0_28, %45, %c1_29, %c0_30] : memref<2x10x10x8xbf16, #tpu.memory_space<vmem>>, vector<1x8x8x8xbf16>
    %47 = vector.shape_cast %46 : vector<1x8x8x8xbf16> to vector<8x8x8xbf16>
    %48 = vector.shape_cast %47 : vector<8x8x8xbf16> to vector<64x8xbf16>
    %c2_i32_31 = arith.constant 2 : i32
    %49 = arith.addi %6, %c2_i32_31 : i32
    %c0_32 = arith.constant 0 : index
    %50 = arith.index_cast %49 : i32 to index
    %c2_33 = arith.constant 2 : index
    %c0_34 = arith.constant 0 : index
    %51 = vector.load %arg7[%c0_32, %50, %c2_33, %c0_34] : memref<2x10x10x8xbf16, #tpu.memory_space<vmem>>, vector<1x8x8x8xbf16>
    %52 = vector.shape_cast %51 : vector<1x8x8x8xbf16> to vector<8x8x8xbf16>
    %53 = vector.shape_cast %52 : vector<8x8x8xbf16> to vector<64x8xbf16>
    %54 = tpu.concatenate %13, %18, %23, %28, %33, %38, %43, %48, %53 in 1 : vector<64x8xbf16>, vector<64x8xbf16>, vector<64x8xbf16>, vector<64x8xbf16>, vector<64x8xbf16>, vector<64x8xbf16>, vector<64x8xbf16>, vector<64x8xbf16>, vector<64x8xbf16> -> vector<64x72xbf16>
    %c0_35 = arith.constant 0 : index
    %c0_36 = arith.constant 0 : index
    %55 = vector.load %arg8[%c0_35, %c0_36] : memref<64x128xf32, #tpu.memory_space<vmem>>, vector<64x128xf32>
    %c0_37 = arith.constant 0 : index
    %c0_38 = arith.constant 0 : index
    %56 = vector.load %arg4[%c0_37, %c0_38] : memref<72x128xbf16, #tpu.memory_space<vmem>>, vector<72x128xbf16>
    %cst_39 = arith.constant dense<0.000000e+00> : vector<64x128xf32>
    %57 = tpu.matmul %54, %56, %cst_39 {dimension_numbers = #tpu.dot_dimension_numbers<[1], [0], [0], [1], [0, 0, 1, 1], [], []>} : vector<64x72xbf16>, vector<72x128xbf16>, vector<64x128xf32> -> vector<64x128xf32>
    %58 = arith.addf %55, %57 : vector<64x128xf32>
    %c0_40 = arith.constant 0 : index
    %c0_41 = arith.constant 0 : index
    %59 = vector.load %arg8[%c0_40, %c0_41] : memref<64x128xf32, #tpu.memory_space<vmem>>, vector<64x128xf32>
    tpu.vector_store %arg8[%c0_40, %c0_41], %58 {strides = array<i32>} : memref<64x128xf32, #tpu.memory_space<vmem>>, vector<64x128xf32>,
    %c0_42 = arith.constant 0 : index
    %c0_43 = arith.constant 0 : index
    %60 = vector.load %arg8[%c0_42, %c0_43] : memref<64x128xf32, #tpu.memory_space<vmem>>, vector<64x128xf32>
    %c0_44 = arith.constant 0 : index
    %c0_45 = arith.constant 0 : index
    %61 = vector.load %arg5[%c0_44, %c0_45] : memref<1x128xf32, #tpu.memory_space<vmem>>, vector<1x128xf32>
    %62 = vector.shape_cast %61 : vector<1x128xf32> to vector<128xf32>
    %63 = vector.shape_cast %62 : vector<128xf32> to vector<1x128xf32>
    %64 = vector.broadcast %63 : vector<1x128xf32> to vector<64x128xf32>
    %65 = arith.addf %60, %64 : vector<64x128xf32>
    %cst_46 = arith.constant 0.000000e+00 : f32
    %66 = vector.broadcast %cst_46 : f32 to vector<64x128xf32>
    %67 = arith.maximumf %65, %66 : vector<64x128xf32>
    %c0_47 = arith.constant 0 : index
    %c0_48 = arith.constant 0 : index
    %c0_49 = arith.constant 0 : index
    %68 = vector.load %arg6[%c0_47, %c0_48, %c0_49] : memref<2x64x128xf32, #tpu.memory_space<vmem>>, vector<1x64x128xf32>
    %69 = vector.shape_cast %68 : vector<1x64x128xf32> to vector<64x128xf32>
    %70 = vector.shape_cast %67 : vector<64x128xf32> to vector<1x64x128xf32>
    tpu.vector_store %arg6[%c0_47, %c0_48, %c0_49], %70 {strides = array<i32>} : memref<2x64x128xf32, #tpu.memory_space<vmem>>, vector<1x64x128xf32>,
    %cst_50 = arith.constant 0.000000e+00 : f32
    %71 = vector.broadcast %cst_50 : f32 to vector<64x128xf32>
    %c0_51 = arith.constant 0 : index
    %c0_52 = arith.constant 0 : index
    %72 = vector.load %arg8[%c0_51, %c0_52] : memref<64x128xf32, #tpu.memory_space<vmem>>, vector<64x128xf32>
    tpu.vector_store %arg8[%c0_51, %c0_52], %71 {strides = array<i32>} : memref<64x128xf32, #tpu.memory_space<vmem>>, vector<64x128xf32>,
    %c0_i32_53 = arith.constant 0 : i32
    %73 = arith.addi %6, %c0_i32_53 : i32
    %c1_54 = arith.constant 1 : index
    %74 = arith.index_cast %73 : i32 to index
    %c0_55 = arith.constant 0 : index
    %c0_56 = arith.constant 0 : index
    %75 = vector.load %arg7[%c1_54, %74, %c0_55, %c0_56] : memref<2x10x10x8xbf16, #tpu.memory_space<vmem>>, vector<1x8x8x8xbf16>
    %76 = vector.shape_cast %75 : vector<1x8x8x8xbf16> to vector<8x8x8xbf16>
    %77 = vector.shape_cast %76 : vector<8x8x8xbf16> to vector<64x8xbf16>
    %c0_i32_57 = arith.constant 0 : i32
    %78 = arith.addi %6, %c0_i32_57 : i32
    %c1_58 = arith.constant 1 : index
    %79 = arith.index_cast %78 : i32 to index
    %c1_59 = arith.constant 1 : index
    %c0_60 = arith.constant 0 : index
    %80 = vector.load %arg7[%c1_58, %79, %c1_59, %c0_60] : memref<2x10x10x8xbf16, #tpu.memory_space<vmem>>, vector<1x8x8x8xbf16>
    %81 = vector.shape_cast %80 : vector<1x8x8x8xbf16> to vector<8x8x8xbf16>
    %82 = vector.shape_cast %81 : vector<8x8x8xbf16> to vector<64x8xbf16>
    %c0_i32_61 = arith.constant 0 : i32
    %83 = arith.addi %6, %c0_i32_61 : i32
    %c1_62 = arith.constant 1 : index
    %84 = arith.index_cast %83 : i32 to index
    %c2_63 = arith.constant 2 : index
    %c0_64 = arith.constant 0 : index
    %85 = vector.load %arg7[%c1_62, %84, %c2_63, %c0_64] : memref<2x10x10x8xbf16, #tpu.memory_space<vmem>>, vector<1x8x8x8xbf16>
    %86 = vector.shape_cast %85 : vector<1x8x8x8xbf16> to vector<8x8x8xbf16>
    %87 = vector.shape_cast %86 : vector<8x8x8xbf16> to vector<64x8xbf16>
    %c1_i32_65 = arith.constant 1 : i32
    %88 = arith.addi %6, %c1_i32_65 : i32
    %c1_66 = arith.constant 1 : index
    %89 = arith.index_cast %88 : i32 to index
    %c0_67 = arith.constant 0 : index
    %c0_68 = arith.constant 0 : index
    %90 = vector.load %arg7[%c1_66, %89, %c0_67, %c0_68] : memref<2x10x10x8xbf16, #tpu.memory_space<vmem>>, vector<1x8x8x8xbf16>
    %91 = vector.shape_cast %90 : vector<1x8x8x8xbf16> to vector<8x8x8xbf16>
    %92 = vector.shape_cast %91 : vector<8x8x8xbf16> to vector<64x8xbf16>
    %c1_i32_69 = arith.constant 1 : i32
    %93 = arith.addi %6, %c1_i32_69 : i32
    %c1_70 = arith.constant 1 : index
    %94 = arith.index_cast %93 : i32 to index
    %c1_71 = arith.constant 1 : index
    %c0_72 = arith.constant 0 : index
    %95 = vector.load %arg7[%c1_70, %94, %c1_71, %c0_72] : memref<2x10x10x8xbf16, #tpu.memory_space<vmem>>, vector<1x8x8x8xbf16>
    %96 = vector.shape_cast %95 : vector<1x8x8x8xbf16> to vector<8x8x8xbf16>
    %97 = vector.shape_cast %96 : vector<8x8x8xbf16> to vector<64x8xbf16>
    %c1_i32_73 = arith.constant 1 : i32
    %98 = arith.addi %6, %c1_i32_73 : i32
    %c1_74 = arith.constant 1 : index
    %99 = arith.index_cast %98 : i32 to index
    %c2_75 = arith.constant 2 : index
    %c0_76 = arith.constant 0 : index
    %100 = vector.load %arg7[%c1_74, %99, %c2_75, %c0_76] : memref<2x10x10x8xbf16, #tpu.memory_space<vmem>>, vector<1x8x8x8xbf16>
    %101 = vector.shape_cast %100 : vector<1x8x8x8xbf16> to vector<8x8x8xbf16>
    %102 = vector.shape_cast %101 : vector<8x8x8xbf16> to vector<64x8xbf16>
    %c2_i32_77 = arith.constant 2 : i32
    %103 = arith.addi %6, %c2_i32_77 : i32
    %c1_78 = arith.constant 1 : index
    %104 = arith.index_cast %103 : i32 to index
    %c0_79 = arith.constant 0 : index
    %c0_80 = arith.constant 0 : index
    %105 = vector.load %arg7[%c1_78, %104, %c0_79, %c0_80] : memref<2x10x10x8xbf16, #tpu.memory_space<vmem>>, vector<1x8x8x8xbf16>
    %106 = vector.shape_cast %105 : vector<1x8x8x8xbf16> to vector<8x8x8xbf16>
    %107 = vector.shape_cast %106 : vector<8x8x8xbf16> to vector<64x8xbf16>
    %c2_i32_81 = arith.constant 2 : i32
    %108 = arith.addi %6, %c2_i32_81 : i32
    %c1_82 = arith.constant 1 : index
    %109 = arith.index_cast %108 : i32 to index
    %c1_83 = arith.constant 1 : index
    %c0_84 = arith.constant 0 : index
    %110 = vector.load %arg7[%c1_82, %109, %c1_83, %c0_84] : memref<2x10x10x8xbf16, #tpu.memory_space<vmem>>, vector<1x8x8x8xbf16>
    %111 = vector.shape_cast %110 : vector<1x8x8x8xbf16> to vector<8x8x8xbf16>
    %112 = vector.shape_cast %111 : vector<8x8x8xbf16> to vector<64x8xbf16>
    %c2_i32_85 = arith.constant 2 : i32
    %113 = arith.addi %6, %c2_i32_85 : i32
    %c1_86 = arith.constant 1 : index
    %114 = arith.index_cast %113 : i32 to index
    %c2_87 = arith.constant 2 : index
    %c0_88 = arith.constant 0 : index
    %115 = vector.load %arg7[%c1_86, %114, %c2_87, %c0_88] : memref<2x10x10x8xbf16, #tpu.memory_space<vmem>>, vector<1x8x8x8xbf16>
    %116 = vector.shape_cast %115 : vector<1x8x8x8xbf16> to vector<8x8x8xbf16>
    %117 = vector.shape_cast %116 : vector<8x8x8xbf16> to vector<64x8xbf16>
    %118 = tpu.concatenate %77, %82, %87, %92, %97, %102, %107, %112, %117 in 1 : vector<64x8xbf16>, vector<64x8xbf16>, vector<64x8xbf16>, vector<64x8xbf16>, vector<64x8xbf16>, vector<64x8xbf16>, vector<64x8xbf16>, vector<64x8xbf16>, vector<64x8xbf16> -> vector<64x72xbf16>
    %c0_89 = arith.constant 0 : index
    %c0_90 = arith.constant 0 : index
    %119 = vector.load %arg8[%c0_89, %c0_90] : memref<64x128xf32, #tpu.memory_space<vmem>>, vector<64x128xf32>
    %c0_91 = arith.constant 0 : index
    %c0_92 = arith.constant 0 : index
    %120 = vector.load %arg4[%c0_91, %c0_92] : memref<72x128xbf16, #tpu.memory_space<vmem>>, vector<72x128xbf16>
    %cst_93 = arith.constant dense<0.000000e+00> : vector<64x128xf32>
    %121 = tpu.matmul %118, %120, %cst_93 {dimension_numbers = #tpu.dot_dimension_numbers<[1], [0], [0], [1], [0, 0, 1, 1], [], []>} : vector<64x72xbf16>, vector<72x128xbf16>, vector<64x128xf32> -> vector<64x128xf32>
    %122 = arith.addf %119, %121 : vector<64x128xf32>
    %c0_94 = arith.constant 0 : index
    %c0_95 = arith.constant 0 : index
    %123 = vector.load %arg8[%c0_94, %c0_95] : memref<64x128xf32, #tpu.memory_space<vmem>>, vector<64x128xf32>
    tpu.vector_store %arg8[%c0_94, %c0_95], %122 {strides = array<i32>} : memref<64x128xf32, #tpu.memory_space<vmem>>, vector<64x128xf32>,
    %c0_96 = arith.constant 0 : index
    %c0_97 = arith.constant 0 : index
    %124 = vector.load %arg8[%c0_96, %c0_97] : memref<64x128xf32, #tpu.memory_space<vmem>>, vector<64x128xf32>
    %c0_98 = arith.constant 0 : index
    %c0_99 = arith.constant 0 : index
    %125 = vector.load %arg5[%c0_98, %c0_99] : memref<1x128xf32, #tpu.memory_space<vmem>>, vector<1x128xf32>
    %126 = vector.shape_cast %125 : vector<1x128xf32> to vector<128xf32>
    %127 = vector.shape_cast %126 : vector<128xf32> to vector<1x128xf32>
    %128 = vector.broadcast %127 : vector<1x128xf32> to vector<64x128xf32>
    %129 = arith.addf %124, %128 : vector<64x128xf32>
    %cst_100 = arith.constant 0.000000e+00 : f32
    %130 = vector.broadcast %cst_100 : f32 to vector<64x128xf32>
    %131 = arith.maximumf %129, %130 : vector<64x128xf32>
    %c1_101 = arith.constant 1 : index
    %c0_102 = arith.constant 0 : index
    %c0_103 = arith.constant 0 : index
    %132 = vector.load %arg6[%c1_101, %c0_102, %c0_103] : memref<2x64x128xf32, #tpu.memory_space<vmem>>, vector<1x64x128xf32>
    %133 = vector.shape_cast %132 : vector<1x64x128xf32> to vector<64x128xf32>
    %134 = vector.shape_cast %131 : vector<64x128xf32> to vector<1x64x128xf32>
    tpu.vector_store %arg6[%c1_101, %c0_102, %c0_103], %134 {strides = array<i32>} : memref<2x64x128xf32, #tpu.memory_space<vmem>>, vector<1x64x128xf32>,
    return
  }
  func.func @transform_0(%arg0: i32, %arg1: i32, %arg2: i32) -> (i32, i32, i32, i32) {
    %c0_i32 = arith.constant 0 : i32
    %c0_i32_0 = arith.constant 0 : i32
    %c0_i32_1 = arith.constant 0 : i32
    %c0_i32_2 = arith.constant 0 : i32
    return %arg0, %c0_i32, %c0_i32_0, %c0_i32_1 : i32, i32, i32, i32
  }
  func.func @transform_1(%arg0: i32, %arg1: i32, %arg2: i32) -> (i32, i32) {
    %c0_i32 = arith.constant 0 : i32
    %c0_i32_0 = arith.constant 0 : i32
    return %c0_i32, %arg1 : i32, i32
  }
  func.func @transform_2(%arg0: i32, %arg1: i32, %arg2: i32) -> (i32, i32) {
    %c0_i32 = arith.constant 0 : i32
    %c0_i32_0 = arith.constant 0 : i32
    return %c0_i32, %arg1 : i32, i32
  }
  func.func @transform_3(%arg0: i32, %arg1: i32, %arg2: i32) -> (i32, i32, i32) {
    %c0_i32 = arith.constant 0 : i32
    return %arg0, %arg2, %arg1 : i32, i32, i32
  }
}

</mosaic_0001>

<bundles_post_ra>
// kernel: tpu_custom_call.1
= control target key start
LH: loop header
LB: loop body
LE: loop exit
PB: predicated region body
PF: predicated region fallthrough
CT: control target
= control target key end

     0   :  { %8 = vsyncpa [#allocation5], 0  ;;  %s4403_s0 = inlined_call_operand.hbm [shape: f32[2,8,8,8], index: 0, kind: input, shape index: {}]   ;;  %s4404_s1 = inlined_call_operand.hbm [shape: bf16[72,384], index: 1, kind: input, shape index: {}]   ;;  %s4405_s2 = inlined_call_operand.hbm [shape: f32[1,384], index: 2, kind: input, shape index: {}]   ;;  %s4406_s3 = inlined_call_operand.hbm [shape: f32[2,64,384], index: 3, kind: output, shape index: {}]  }
   0x1   :  { %9 = vsyncpa [#allocation8], 0 }
   0x2   :  { %11 = vsyncpa [#allocation8 + $0x1], 0 }
   0x3   :  { %12 = vsyncpa [#allocation6], 0 }
   0x4   :  { %14 = vsyncpa [#allocation6 + $0x1], 0  ;;  %s3421_s12 = smov 0   ;;  %s3423_s13 = smov 0  }
   0x5   :  { %s3425_s14 = smov 0   ;;  %s3427_s15 = smov 0  }
   0x6   :  { %s3429_s16 = smov 0   ;;  %s3431_s17 = smov 0  }
   0x7 LB: > { %s35_s18 = sadd.s32 1, %s3378_s16  ;;  %s72_s19 = sadd.s32 1, %s3370_s14  ;;  %s3382_s17 = sphi %s3431_s17, %s20_s17   ;;  %s3378_s16 = sphi %s3429_s16, %s4424_s16   ;;  %s3374_s15 = sphi %s3427_s15, %s4423_s15   ;;  %s3370_s14 = sphi %s3425_s14, %s4422_s14   ;;  %s3366_s13 = sphi %s3423_s13, %s4421_s13   ;;  %s3362_s12 = sphi %s3421_s12, %s4420_s12  }
   0x8   : > { %p37_p0 = scmp.ge.s32.totalorder %s35_s18, 3  ;;  %p79_p1 = scmp.ne.s32.totalorder %s3370_s14, %s3366_s13 }
   0x9   : > { %p80_p2 = scmp.eq.s32.totalorder %s3382_s17, 0  ;;  %p3136_p4 = scmp.lt.s32.totalorder %s3382_s17, 3 }
   0xa   : > { %s4426_s18 = smov (%p37_p0, %s35_s18), 0  ;;  %s183_s21 = sand.u32 1, %s3382_s17  }
   0xb   : > { %p81_p3 = por %p80_p2, %p79_p1  ;;  %s69_s20 = ssub.s32 %s3378_s16, %s4426_s18 }
   0xc   : > { %p70_p5 = scmp.eq.s32.totalorder %s69_s20, 0  ;;  %s185_s22 = sand.u32 1, %s3370_s14  }
   0xd   : > { %s2744_s23 = sshll.u32 %s3378_s16, 2  ;;  %s3108_s25 = smul.u32 36, %s185_s22 }
   0xe   : > { %s3468_s24 = scalar_select %p70_p5, %s3370_s14, %s72_s19  }
   0xf   : > { %s191_s28 = scalar_lea.hbm %s4404_s1, %s2744_s23  ;;  %p3475_p6 = pnand %p3136_p4, %p81_p3 }
  0x10   : > { %s192_s29 = sshll.u32 %s191_s28, 4  ;;  %s187_s4 = scalar_lea.vmem [#allocation7], %s3108_s25  ;;  %s193_s29 = int_to_ptr.hbm [resolvable:$true] %s192_s29 }
  0x11   : > { %s194_s5 = sshll.u32 %s187_s4, 4  ;;  %s3479_s6 = scalar_lea.sflag [#allocation8], %s183_s21  ;;  %s195_s5 = int_to_ptr.vmem [resolvable:$true] %s194_s5 }
  0x12   : > { %s3384_s7 = smov 192   ;;  %s3385_s8 = smov 64  }
  0x13   : > { %s3386_s9 = smov 4   ;;  %s3485_s10 = sadd.s32 4294967295, %s3382_s17  }
  0x14   : > { %3127 = dma.hbm_to_vmem [thread:$0]  (!%p3475_p6), %s193_s29, 576, %s195_s5, %s3479_s6, %s3384_s7, %s3385_s8, %s3386_s9  }
  0x15   : > { %s2740_s11 = sadd.s32 4294967294, %s3382_s17   ;;  %p85_p7 = scmp.ne.s32.totalorder %s3366_s13, %s3362_s12 }
  0x16   : > { %p86_p8 = scmp.eq.s32.totalorder %s3485_s10, 0  ;;  %p139_p9 = scmp.eq.s32.totalorder %s3485_s10, 2 }
  0x17   : > { %p145_p10 = scmp.eq.s32.totalorder %s2740_s11, 2  ;;  %p2741_p12 = scmp.ge.s32.totalorder %s3382_s17, 1 }
  0x18   : > { %p3494_p11 = por %p86_p8, %p85_p7  ;;  %p3502_p13 = por %p139_p9, %p79_p1 }
  0x19   : > { %p3506_p0 = por %p145_p10, %p85_p7  ;;  %p152_p2 = scmp.lt.s32.totalorder %s3382_s17, 4 }
  0x1a   : > { %s167_s26 = sshll.u32 %s4403_s0, 4  ;;  %s3387_s28 = smov [#allocation4]   ;;  %s168_s26 = int_to_ptr.hbm [resolvable:$true] %s167_s26 }
  0x1b   : > { %p3514_p3 = pnand %p2741_p12, %p152_p2  ;;  %s169_s29 = sshll.u32 %s3387_s28, 4  ;;  %s170_s29 = int_to_ptr.vmem [resolvable:$true] %s169_s29 }
  0x1c   : > { %s210_s7 = scalar_lea.hbm %s4405_s2, %s3378_s16  ;;  %s207_s9 = scalar_lea.vmem [#allocation9], %s185_s22 }
  0x1d   : > { %p3120_p1 = pneg %p3514_p3  ;;  %s212_s8 = sshll.u32 %s210_s7, 4  ;;  %s213_s8 = int_to_ptr.hbm [resolvable:$true] %s212_s8 }
  0x1e   : > { %s214_s11 = sshll.u32 %s207_s9, 4  ;;  %s3388_s23 = smov 128   ;;  %s215_s11 = int_to_ptr.vmem [resolvable:$true] %s214_s11 }
  0x1f   : > { %p3121_p4 = pnand %p3120_p1, %p86_p8  ;;  %s3389_s25 = smov 8  }
  0x20   : > { %3130 = dma.hbm_to_vmem [thread:$0]  (!%p3475_p6), %s213_s8, 16, %s215_s11, %s3479_s6  }
  0x21   : > { %3123 = dma.hbm_to_vmem [thread:$0]  (!%p3121_p4), %s168_s26, 2048, %s170_s29, [#allocation5], %s3388_s23, %s3388_s23, %s3389_s25  }
  0x22   : > { %223 = sbr.rel (%p3514_p3) target bundleno = 581 (0x245), region = 32 }
  0x27   : > { %3349 = dma.done.wait (%p86_p8), [#allocation5], 2048  }
  0x28   : > { %3351 = vsyncadd (%p86_p8), [#allocation5], 4294965248  ;;  %s230_s22 = sand.u32 1, %s3485_s10   ;;  %s3539_s28 = sand.u32 1, %s3366_s13  }
  0x29   : > { %s3109_s26 = smul.u32 36, %s3539_s28  ;;  %s231_s29 = scalar_lea.sflag [#allocation8], %s230_s22 }
  0x2b   : > { %s3542_s30 = scalar_lea.vmem [#allocation7], %s3109_s26 }
  0x2c   : > { %3353 = dma.done.wait (%p3494_p11), %s231_s29, 592  }
  0x2d   : > { %3355 = vsyncadd (%p3494_p11), %s231_s29, 4294966704  ;;  %s2747_s6 = sshll.u32 %s3539_s28, 7  ;;  %p275_p5 = scmp.eq.s32.totalorder %s3374_s15, 0 }
  0x2e   : > { %s243_s27 = scalar_lea.vmem [#allocation9], %s3539_s28  ;;  %s3551_s4 = scalar_lea.vmem [#allocation10], %s2747_s6  ;;  %vm281_vm0 = vcmask (%p275_p5), 60416   ;;  %v3390_v0 = vmov (%p275_p5), 0   ;;  %vm283_vm1 = vcmask (%p275_p5), 57344   ;;  %v323_v1 = vld [vmem:[#allocation4] sm:$0xff] (%p275_p5) }
  0x2f   : > { %280 = sbr.rel (!%p275_p5) target bundleno = 119 (0x77), region = 48  ;;  %285 = vst.msk [vmem:[#allocation2 + $0x8] sm:$0xf] (%p275_p5), %vm281_vm0, %v3390_v0  ;;  %v324_v2 = vld [vmem:[#allocation4 + $0x8] sm:$0xff] (%p275_p5)  ;;  %v339_v3 = vpack.c.bf16 (%p275_p5), %v323_v1, %v323_v1  ;;  %v325_v4 = vld [vmem:[#allocation4 + $0x10] sm:$0xff] (%p275_p5)  ;;  %v326_v6 = vld [vmem:[#allocation4 + $0x18] sm:$0xff] (%p275_p5) }
  0x30   : > { %282 = vst.msk [vmem:[#allocation2] sm:$0xf] (%p275_p5), %vm281_vm0, %v3390_v0  ;;  %v340_v5 = vpack.c.bf16 (%p275_p5), %v324_v2, %v324_v2  ;;  %v341_v7 = vpack.c.bf16 (%p275_p5), %v325_v4, %v325_v4  ;;  %v342_v9 = vpack.c.bf16 (%p275_p5), %v326_v6, %v326_v6  ;;  %v327_v10 = vld [vmem:[#allocation4 + $0x20] sm:$0xff] (%p275_p5)  ;;  %v328_v12 = vld [vmem:[#allocation4 + $0x28] sm:$0xff] (%p275_p5)  ;;  %v329_v17 = vld [vmem:[#allocation4 + $0x30] sm:$0xff] (%p275_p5) }
  0x31   : > { %287 = vst.msk [vmem:[#allocation2 + $0x10] sm:$0xf] (%p275_p5), %vm281_vm0, %v3390_v0  ;;  %v356_v8 = vshrl.u32 (%p275_p5), %v339_v3, 16  ;;  %v359_v15 = vshll.u32 (%p275_p5), %v339_v3, 16  ;;  %v3613_v16 = vpack.c.bf16 (%p275_p5), %v327_v10, %v327_v10  ;;  %vm517_vm2 = vsmask.f32 (%p275_p5), 7938 }
  0x32   : > { %289 = vst.msk [vmem:[#allocation2 + $0x18] sm:$0xf] (%p275_p5), %vm281_vm0, %v3390_v0  ;;  %v364_v11 = vshrl.u32 (%p275_p5), %v340_v5, 16  ;;  %v372_v13 = vshrl.u32 (%p275_p5), %v341_v7, 16  ;;  %v380_v18 = vshrl.u32 (%p275_p5), %v342_v9, 16  ;;  %v3617_v19 = vpack.c.bf16 (%p275_p5), %v328_v12, %v328_v12  ;;  %v330_v22 = vld [vmem:[#allocation4 + $0x38] sm:$0xff] (%p275_p5)  ;;  %vm3632_vm4 = vmand (%p275_p5), %vm281_vm0, %vm517_vm2 }
  0x33   : > { %291 = vst.msk [vmem:[#allocation2 + $0x20] sm:$0xf] (%p275_p5), %vm281_vm0, %v3390_v0  ;;  %v358_v14 = vrot.slane (%p275_p5), %v356_v8, 7  ;;  %v367_v21 = vshll.u32 (%p275_p5), %v340_v5, 16  ;;  %vm523_vm3 = vsmask.f32 (%p275_p5), 256  ;;  %v3623_v25 = vpack.c.bf16 (%p275_p5), %v329_v17, %v329_v17 }
  0x34   : > { %293 = vst.msk [vmem:[#allocation2 + $0x28] sm:$0xf] %vm281_vm0, %v3390_v0  ;;  %v366_v20 = vrot.slane %v364_v11, 7  ;;  %v374_v23 = vrot.slane %v372_v13, 7  ;;  %v375_v24 = vshll.u32 %v341_v7, 16  ;;  %v383_v28 = vshll.u32 %v342_v9, 16  ;;  %vm3645_vm5 = vmand %vm283_vm1, %vm523_vm3 }
  0x35   : > { %295 = vst.msk [vmem:[#allocation2 + $0x30] sm:$0xf] %vm281_vm0, %v3390_v0  ;;  %v361_v26 = vor.u32 %v359_v15, %v358_v14  ;;  %v388_v29 = vshrl.u32 %v3613_v16, 16  ;;  %v362_v31 = vrot.slane %v358_v14, 4  ;;  %v3636_v33 = vrot.slane %v380_v18, 7  ;;  %v331_v36 = vld [vmem:[#allocation4 + $0x40] sm:$0xff] }
  0x36   : > { %297 = vst.msk [vmem:[#allocation2 + $0x38] sm:$0xf] %vm281_vm0, %v3390_v0  ;;  %v519_v27 = vld [vmem:[#allocation2 + $0x8] sm:$0xf]  ;;  %v396_v34 = vshrl.u32 %v3617_v19, 16  ;;  %v3639_v35 = vpack.c.bf16 %v330_v22, %v330_v22  ;;  %v369_v39 = vor.u32 %v367_v21, %v366_v20  ;;  %v370_v41 = vrot.slane %v366_v20, 4 }
  0x37   : > { %299 = vst.msk [vmem:[#allocation2 + $0x40] sm:$0xf] %vm281_vm0, %v3390_v0  ;;  %v377_v42 = vor.u32 %v375_v24, %v374_v23  ;;  %v378_v43 = vrot.slane %v374_v23, 4  ;;  %v404_v44 = vshrl.u32 %v3623_v25, 16  ;;  %v332_v45 = vld [vmem:[#allocation4 + $0x48] sm:$0xff]  ;;  %v520_v46 = vsel %vm3632_vm4, %v361_v26, %v519_v27  ;;  %v333_v56 = vld [vmem:[#allocation4 + $0x50] sm:$0xff] }
  0x38   : > { %301 = vst.msk [vmem:[#allocation2 + $0x48] sm:$0xf] %vm281_vm0, %v3390_v0  ;;  %v528_v32 = vld [vmem:[#allocation2 + $0x10] sm:$0xf]  ;;  %v390_v48 = vrot.slane %v388_v29, 7  ;;  %v391_v49 = vshll.u32 %v3613_v16, 16  ;;  %v3657_v50 = vpack.c.bf16 %v331_v36, %v331_v36  ;;  %v385_v52 = vor.u32 %v383_v28, %v3636_v33 }
  0x39   : > { %303 = vst.msk [vmem:[#allocation2 + $0x50] sm:$0xf] %vm281_vm0, %v3390_v0  ;;  %v534_v40 = vld [vmem:[#allocation2 + $0x18] sm:$0xf]  ;;  %v3664_v54 = vrot.slane %v396_v34, 7  ;;  %v412_v55 = vshrl.u32 %v3639_v35, 16  ;;  %v529_v57 = vsel %vm3632_vm4, %v369_v39, %v528_v32  ;;  %v3673_v61 = vpack.c.bf16 %v332_v45, %v332_v45 }
  0x3a   : > { %305 = vst.msk [vmem:[#allocation2 + $0x58] sm:$0xf] %vm281_vm0, %v3390_v0  ;;  %v540_v53 = vld [vmem:[#allocation2 + $0x20] sm:$0xf]  ;;  %v386_v59 = vrot.slane %v3636_v33, 4  ;;  %v399_v60 = vshll.u32 %v3617_v19, 16  ;;  %v535_v63 = vsel %vm3632_vm4, %v377_v42, %v534_v40  ;;  %v393_v5 = vor.u32 %v391_v49, %v390_v48 }
  0x3b   : > { %307 = vst.msk [vmem:[#allocation2 + $0x60] sm:$0xf] %vm281_vm0, %v3390_v0  ;;  %v546_v1 = vld [vmem:[#allocation2 + $0x28] sm:$0xf]  ;;  %v406_v2 = vrot.slane %v404_v44, 7  ;;  %v334_v3 = vld [vmem:[#allocation4 + $0x58] sm:$0xff]  ;;  %v3681_v8 = vpack.c.bf16 %v333_v56, %v333_v56  ;;  %v541_v15 = vsel %vm3632_vm4, %v385_v52, %v540_v53 }
  0x3c   : > { %309 = vst.msk [vmem:[#allocation2 + $0x68] sm:$0xf] %vm281_vm0, %v3390_v0  ;;  %v394_v6 = vrot.slane %v390_v48, 4  ;;  %v420_v7 = vshrl.u32 %v3657_v50, 16  ;;  %v552_v10 = vld [vmem:[#allocation2 + $0x30] sm:$0xf]  ;;  %v401_v17 = vor.u32 %v399_v60, %v3664_v54  ;;  %v3691_v19 = vpack.c.bf16 %v334_v3, %v334_v3 }
  0x3d   : > { %311 = vst.msk [vmem:[#allocation2 + $0x70] sm:$0xf] %vm281_vm0, %v3390_v0  ;;  %v402_v11 = vrot.slane %v3664_v54, 4  ;;  %v414_v12 = vrot.slane %v412_v55, 7  ;;  %v415_v13 = vshll.u32 %v3639_v35, 16  ;;  %v335_v14 = vld [vmem:[#allocation4 + $0x60] sm:$0xff]  ;;  %v547_v26 = vsel %vm3632_vm4, %v393_v5, %v546_v1 }
  0x3e   : > { %313 = vst.msk [vmem:[#allocation2 + $0x78] sm:$0xf] %vm281_vm0, %v3390_v0  ;;  %v428_v18 = vshrl.u32 %v3673_v61, 16  ;;  %v336_v20 = vld [vmem:[#allocation4 + $0x68] sm:$0xff]  ;;  %v558_v23 = vld [vmem:[#allocation2 + $0x38] sm:$0xf]  ;;  %v553_v39 = vsel %vm3632_vm4, %v401_v17, %v552_v10 }
  0x3f   : > { %315 = vst.msk [vmem:[#allocation2 + $0x80] sm:$0xf] %vm281_vm0, %v3390_v0  ;;  %v423_v24 = vshll.u32 %v3657_v50, 16  ;;  %v422_v28 = vrot.slane %v420_v7, 7  ;;  %v436_v29 = vshrl.u32 %v3681_v8, 16  ;;  %v410_v33 = vrot.slane %v406_v2, 4 }
  0x40   : > { %317 = vst.msk [vmem:[#allocation2 + $0x88] sm:$0xf] %vm281_vm0, %v3390_v0  ;;  %v417_v34 = vor.u32 %v415_v13, %v414_v12  ;;  %v564_v35 = vld [vmem:[#allocation2 + $0x40] sm:$0xf]  ;;  %v3704_v36 = vpack.c.bf16 %v336_v20, %v336_v20  ;;  %v444_v42 = vshrl.u32 %v3691_v19, 16  ;;  %v418_v45 = vrot.slane %v414_v12, 4 }
  0x41   : > { %319 = vst.msk [vmem:[#allocation2 + $0x90] sm:$0xf] %vm281_vm0, %v3390_v0  ;;  %v425_v49 = vor.u32 %v423_v24, %v422_v28  ;;  %v438_v50 = vrot.slane %v436_v29, 7  ;;  %v570_v55 = vld [vmem:[#allocation2 + $0x58] sm:$0xf]  ;;  %v426_v56 = vrot.slane %v422_v28, 4 }
  0x42   : > { %321 = vst.msk [vmem:[#allocation2 + $0x98] sm:$0xf] %vm281_vm0, %v3390_v0  ;;  %v565_v54 = vsel %vm3632_vm4, %v417_v34, %v564_v35  ;;  %v446_v60 = vrot.slane %v444_v42, 7  ;;  %v576_v1 = vld [vmem:[#allocation2 + $0x60] sm:$0xf] }
  0x43   : > { %286 = vst.msk [vmem:[#allocation2 + $0xc] sm:$0x1] %vm283_vm1, %v3390_v0  ;;  %v571_v3 = vsel %vm3632_vm4, %v425_v49, %v570_v55  ;;  %v442_v10 = vrot.slane %v438_v50, 4 }
  0x44   : > { %284 = vst.msk [vmem:[#allocation2 + $0x4] sm:$0x1] %vm283_vm1, %v3390_v0 }
  0x45   : > { %288 = vst.msk [vmem:[#allocation2 + $0x14] sm:$0x1] %vm283_vm1, %v3390_v0 }
  0x46   : > { %290 = vst.msk [vmem:[#allocation2 + $0x1c] sm:$0x1] %vm283_vm1, %v3390_v0  ;;  %v600_v35 = vld [vmem:[#allocation2 + $0x80] sm:$0xf] }
  0x47   : > { %292 = vst.msk [vmem:[#allocation2 + $0x24] sm:$0x1] %vm283_vm1, %v3390_v0  ;;  %v606_v42 = vld [vmem:[#allocation2 + $0x88] sm:$0xf] }
  0x48   : > { %294 = vst.msk [vmem:[#allocation2 + $0x2c] sm:$0x1] %vm283_vm1, %v3390_v0 }
  0x49   : > { %296 = vst.msk [vmem:[#allocation2 + $0x34] sm:$0x1] %vm283_vm1, %v3390_v0 }
  0x4a   : > { %298 = vst.msk [vmem:[#allocation2 + $0x3c] sm:$0x1] %vm283_vm1, %v3390_v0  ;;  %v525_v38 = vld [vmem:[#allocation2 + $0xc] sm:$0x1] }
  0x4b   : > { %300 = vst.msk [vmem:[#allocation2 + $0x44] sm:$0x1] %vm283_vm1, %v3390_v0  ;;  %v526_v51 = vsel %vm3645_vm5, %v362_v31, %v525_v38  ;;  %v3700_v31 = vpack.c.bf16 %v335_v14, %v335_v14  ;;  %v337_v38 = vld [vmem:[#allocation4 + $0x70] sm:$0xff] }
  0x4c   : > { %302 = vst.msk [vmem:[#allocation2 + $0x4c] sm:$0x1] %vm283_vm1, %v3390_v0  ;;  %v531_v47 = vld [vmem:[#allocation2 + $0x14] sm:$0x1]  ;;  %v3715_v52 = vpack.c.bf16 %v337_v38, %v337_v38 }
  0x4d   : > { %304 = vst.msk [vmem:[#allocation2 + $0x54] sm:$0x1] %vm283_vm1, %v3390_v0  ;;  %v537_v58 = vld [vmem:[#allocation2 + $0x1c] sm:$0x1]  ;;  %v532_v62 = vsel %vm3645_vm5, %v370_v41, %v531_v47  ;;  %v430_v41 = vrot.slane %v428_v18, 7 }
  0x4e   : > { %306 = vst.msk [vmem:[#allocation2 + $0x5c] sm:$0x1] %vm283_vm1, %v3390_v0  ;;  %v543_v4 = vld [vmem:[#allocation2 + $0x24] sm:$0x1]  ;;  %v538_v9 = vsel %vm3645_vm5, %v378_v43, %v537_v58  ;;  %v338_v47 = vld [vmem:[#allocation4 + $0x78] sm:$0xff]  ;;  %v468_v7 = vshrl.u32 %v3715_v52, 16 }
  0x4f   : > { %308 = vst.msk [vmem:[#allocation2 + $0x64] sm:$0x1] %vm283_vm1, %v3390_v0  ;;  %v549_v16 = vld [vmem:[#allocation2 + $0x2c] sm:$0x1]  ;;  %v544_v21 = vsel %vm3645_vm5, %v386_v59, %v543_v4  ;;  %v588_v18 = vld [vmem:[#allocation2 + $0x70] sm:$0xf] }
  0x50   : > { %310 = vst.msk [vmem:[#allocation2 + $0x6c] sm:$0x1] %vm283_vm1, %v3390_v0  ;;  %v555_v27 = vld [vmem:[#allocation2 + $0x34] sm:$0x1]  ;;  %v550_v32 = vsel %vm3645_vm5, %v394_v6, %v549_v16  ;;  %v471_v24 = vshll.u32 %v3715_v52, 16 }
  0x51   : > { %312 = vst.msk [vmem:[#allocation2 + $0x74] sm:$0x1] %vm283_vm1, %v3390_v0  ;;  %v561_v40 = vld [vmem:[#allocation2 + $0x3c] sm:$0x1]  ;;  %v556_v43 = vsel %vm3645_vm5, %v402_v11, %v555_v27 }
  0x52   : > { %314 = vst.msk [vmem:[#allocation2 + $0x7c] sm:$0x1] %vm283_vm1, %v3390_v0  ;;  %v567_v48 = vld [vmem:[#allocation2 + $0x44] sm:$0x1]  ;;  %v562_v53 = vsel %vm3645_vm5, %v410_v33, %v561_v40 }
  0x53   : > { %316 = vst.msk [vmem:[#allocation2 + $0x84] sm:$0x1] %vm283_vm1, %v3390_v0 }
  0x54   : > { %318 = vst.msk [vmem:[#allocation2 + $0x8c] sm:$0x1] %vm283_vm1, %v3390_v0 }
  0x55   : > { %320 = vst.msk [vmem:[#allocation2 + $0x94] sm:$0x1] %vm283_vm1, %v3390_v0  ;;  %v573_v58 = vld [vmem:[#allocation2 + $0x5c] sm:$0x1] }
  0x56   : > { %322 = vst.msk [vmem:[#allocation2 + $0x9c] sm:$0x1] %vm283_vm1, %v3390_v0  ;;  %v407_v0 = vshll.u32 %v3623_v25, 16  ;;  %v431_v25 = vshll.u32 %v3673_v61, 16  ;;  %v447_v61 = vshll.u32 %v3691_v19, 16  ;;  %v450_v19 = vrot.slane %v446_v60, 4 }
  0x57   : > { %521 = vst [vmem:[#allocation2 + $0x8] sm:$0xf] %v520_v46  ;;  %v439_v46 = vshll.u32 %v3681_v8, 16  ;;  %v579_v4 = vld [vmem:[#allocation2 + $0x64] sm:$0x1]  ;;  %v574_v8 = vsel %vm3645_vm5, %v426_v56, %v573_v58 }
  0x58   : > { %527 = vst [vmem:[#allocation2 + $0xc] sm:$0x1] %v526_v51  ;;  %v409_v22 = vor.u32 %v407_v0, %v406_v2  ;;  %v452_v51 = vshrl.u32 %v3700_v31, 16  ;;  %v433_v59 = vor.u32 %v431_v25, %v430_v41  ;;  %v434_v2 = vrot.slane %v430_v41, 4  ;;  %v585_v13 = vld [vmem:[#allocation2 + $0x6c] sm:$0x1] }
  0x59   : > { %530 = vst [vmem:[#allocation2 + $0x10] sm:$0xf] %v529_v57  ;;  %v460_v57 = vshrl.u32 %v3704_v36, 16  ;;  %v455_v0 = vshll.u32 %v3700_v31, 16  ;;  %v441_v5 = vor.u32 %v439_v46, %v438_v50  ;;  %v449_v14 = vor.u32 %v447_v61, %v446_v60  ;;  %v597_v29 = vld [vmem:[#allocation2 + $0x7c] sm:$0x1] }
  0x5a   : > { %533 = vst [vmem:[#allocation2 + $0x14] sm:$0x1] %v532_v62  ;;  %v559_v44 = vsel %vm3632_vm4, %v409_v22, %v558_v23  ;;  %v354_v62 = vpack.c.bf16 %v338_v47, %v338_v47  ;;  %v454_v6 = vrot.slane %v452_v51, 7  ;;  %v577_v12 = vsel %vm3632_vm4, %v433_v59, %v576_v1 }
  0x5b   : > { %536 = vst [vmem:[#allocation2 + $0x18] sm:$0xf] %v535_v63  ;;  %v568_v63 = vsel %vm3645_vm5, %v418_v45, %v567_v48  ;;  %v462_v11 = vrot.slane %v460_v57, 7  ;;  %v580_v17 = vsel %vm3645_vm5, %v434_v2, %v579_v4  ;;  %v470_v23 = vrot.slane %v468_v7, 7  ;;  %v609_v45 = vld [vmem:[#allocation2 + $0x8c] sm:$0x1] }
  0x5c   : > { %539 = vst [vmem:[#allocation2 + $0x1c] sm:$0x1] %v538_v9  ;;  %v582_v9 = vld [vmem:[#allocation2 + $0x68] sm:$0xf]  ;;  %v476_v16 = vshrl.u32 %v354_v62, 16  ;;  %v457_v22 = vor.u32 %v455_v0, %v454_v6  ;;  %v586_v25 = vsel %vm3645_vm5, %v442_v10, %v585_v13  ;;  %v458_v27 = vrot.slane %v454_v6, 4 }
  0x5d   : > { %542 = vst [vmem:[#allocation2 + $0x20] sm:$0xf] %v541_v15  ;;  %v463_v15 = vshll.u32 %v3704_v36, 16  ;;  %v583_v20 = vsel %vm3632_vm4, %v441_v5, %v582_v9  ;;  %v589_v28 = vsel %vm3632_vm4, %v449_v14, %v588_v18  ;;  %v479_v33 = vshll.u32 %v354_v62, 16  ;;  %v612_v48 = vld [vmem:[#allocation2 + $0x90] sm:$0xf] }
  0x5e   : > { %545 = vst [vmem:[#allocation2 + $0x24] sm:$0x1] %v544_v21  ;;  %v591_v21 = vld [vmem:[#allocation2 + $0x74] sm:$0x1]  ;;  %v466_v36 = vrot.slane %v462_v11, 4  ;;  %v473_v40 = vor.u32 %v471_v24, %v470_v23  ;;  %v598_v41 = vsel %vm3645_vm5, %v458_v27, %v597_v29 }
  0x5f   : > { %548 = vst [vmem:[#allocation2 + $0x28] sm:$0xf] %v547_v26  ;;  %v594_v26 = vld [vmem:[#allocation2 + $0x78] sm:$0xf]  ;;  %v465_v31 = vor.u32 %v463_v15, %v462_v11  ;;  %v592_v34 = vsel %vm3645_vm5, %v450_v19, %v591_v21  ;;  %v615_v51 = vld [vmem:[#allocation2 + $0x94] sm:$0x1] }
  0x60   : > { %551 = vst [vmem:[#allocation2 + $0x2c] sm:$0x1] %v550_v32  ;;  %v478_v32 = vrot.slane %v476_v16, 7  ;;  %v595_v38 = vsel %vm3632_vm4, %v457_v22, %v594_v26  ;;  %v607_v50 = vsel %vm3632_vm4, %v473_v40, %v606_v42 }
  0x61   : > { %554 = vst [vmem:[#allocation2 + $0x30] sm:$0xf] %v553_v39  ;;  %v603_v39 = vld [vmem:[#allocation2 + $0x84] sm:$0x1] }
  0x62   : > { %557 = vst [vmem:[#allocation2 + $0x34] sm:$0x1] %v556_v43  ;;  %v474_v43 = vrot.slane %v470_v23, 4  ;;  %v481_v46 = vor.u32 %v479_v33, %v478_v32  ;;  %v604_v47 = vsel %vm3645_vm5, %v466_v36, %v603_v39  ;;  %v482_v49 = vrot.slane %v478_v32, 4 }
  0x63   : > { %560 = vst [vmem:[#allocation2 + $0x38] sm:$0xf] %v559_v44  ;;  %v601_v44 = vsel %vm3632_vm4, %v465_v31, %v600_v35 }
  0x64   : > { %563 = vst [vmem:[#allocation2 + $0x3c] sm:$0x1] %v562_v53  ;;  %v610_v52 = vsel %vm3645_vm5, %v474_v43, %v609_v45  ;;  %v613_v53 = vsel %vm3632_vm4, %v481_v46, %v612_v48 }
  0x65   : > { %566 = vst [vmem:[#allocation2 + $0x40] sm:$0xf] %v565_v54  ;;  %v616_v54 = vsel %vm3645_vm5, %v482_v49, %v615_v51 }
  0x66   : > { %569 = vst [vmem:[#allocation2 + $0x44] sm:$0x1] %v568_v63 }
  0x67   : > { %572 = vst [vmem:[#allocation2 + $0x58] sm:$0xf] %v571_v3 }
  0x68   : > { %575 = vst [vmem:[#allocation2 + $0x5c] sm:$0x1] %v574_v8 }
  0x69   : > { %578 = vst [vmem:[#allocation2 + $0x60] sm:$0xf] %v577_v12 }
  0x6a   : > { %581 = vst [vmem:[#allocation2 + $0x64] sm:$0x1] %v580_v17 }
  0x6b   : > { %584 = vst [vmem:[#allocation2 + $0x68] sm:$0xf] %v583_v20 }
  0x6c   : > { %587 = vst [vmem:[#allocation2 + $0x6c] sm:$0x1] %v586_v25 }
  0x6d   : > { %590 = vst [vmem:[#allocation2 + $0x70] sm:$0xf] %v589_v28 }
  0x6e   : > { %593 = vst [vmem:[#allocation2 + $0x74] sm:$0x1] %v592_v34 }
  0x6f   : > { %596 = vst [vmem:[#allocation2 + $0x78] sm:$0xf] %v595_v38 }
  0x70   : > { %599 = vst [vmem:[#allocation2 + $0x7c] sm:$0x1] %v598_v41 }
  0x71   : > { %602 = vst [vmem:[#allocation2 + $0x80] sm:$0xf] %v601_v44 }
  0x72   : > { %605 = vst [vmem:[#allocation2 + $0x84] sm:$0x1] %v604_v47 }
  0x73   : > { %608 = vst [vmem:[#allocation2 + $0x88] sm:$0xf] %v607_v50 }
  0x74   : > { %611 = vst [vmem:[#allocation2 + $0x8c] sm:$0x1] %v610_v52 }
  0x75   : > { %614 = vst [vmem:[#allocation2 + $0x90] sm:$0xf] %v613_v53 }
  0x76   : > { %617 = vst [vmem:[#allocation2 + $0x94] sm:$0x1] %v616_v54 }
  0x77 PF: > { %v642_v55 = vld [vmem:[#allocation2 + $0x24] sm:$0x1]  ;;  %v643_v56 = vld [vmem:[#allocation2 + $0x2c] sm:$0x1]  ;;  %vm785_vm6 = vcmask 1042432   ;;  %vm786_vm7 = vcmask 1046532  }
  0x78   : > { %v806_v60 = vrot.slane %v642_v55, 5  ;;  %vm3761_vm8 = vmor %vm785_vm6, %vm786_vm7  ;;  %v810_v62 = vrot.slane %v643_v56, 5  ;;  %v715_v63 = vshll.u32 %v642_v55, 16  ;;  %vm646_vm9 = vsmask.f32 3328  ;;  %s3391_s10 = smov 16  }
  0x79   : > { %vm647_vm10 = vsmask.f32 7440  ;;  %v2901_v6 = vld [vmem:[#allocation2 + $0x74] sm:$0x1]  ;;  %v2902_v11 = vld [vmem:[#allocation2 + $0x7c] sm:$0x1] }
  0x7a   : > { %v717_v8 = vrot.slane %v715_v63, 5  ;;  %v729_v14 = vshll.u32 %v643_v56, 16  ;;  %v2909_v15 = vld [vmem:[#allocation2 + $0x70] sm:$0xe]  ;;  %v1787_v16 = vrot.slane %v2901_v6, 5  ;;  %v1791_v25 = vrot.slane %v2902_v11, 5  ;;  %vm3772_vm11 = vmor %vm646_vm9, %vm647_vm10 }
  0x7b   : > { %v2910_v20 = vld [vmem:[#allocation2 + $0x78] sm:$0xe]  ;;  %v2917_v21 = vrot.slane %v2909_v15, 9  ;;  %v2893_v26 = vld [vmem:[#allocation2 + $0x70] sm:$0xf]  ;;  %v1699_v38 = vshll.u32 %v2901_v6, 16 }
  0x7c   : > { %v731_v23 = vrot.slane %v729_v14, 5  ;;  %v2918_v24 = vrot.slane %v2910_v20, 9  ;;  %v2894_v31 = vld [vmem:[#allocation2 + $0x78] sm:$0xf]  ;;  %v1690_v32 = vshrl.u32 %v2893_v26, 16  ;;  %v1693_v33 = vshll.u32 %v2893_v26, 16 }
  0x7d   : > { %v765_v57 = vld [vmem:[#allocation2 + $0x20] sm:$0xe]  ;;  %v1788_v29 = vsel %vm3761_vm8, %v2917_v21, %v1787_v16  ;;  %v2925_v43 = vld [vmem:[#allocation2 + $0x78] sm:$0xf]  ;;  %v1701_v45 = vrot.slane %v1699_v38, 5  ;;  %v1704_v46 = vshrl.u32 %v2894_v31, 16 }
  0x7e   : > { %v766_v58 = vld [vmem:[#allocation2 + $0x28] sm:$0xe]  ;;  %v2753_v59 = vrot.slane %v765_v57, 9  ;;  %v634_v37 = vld [vmem:[#allocation2 + $0x20] sm:$0xf]  ;;  %v1792_v35 = vsel %vm3761_vm8, %v2918_v24, %v1791_v25  ;;  %v2219_v36 = vunpack.c.l.b16 %v1788_v29  ;;  %v1692_v41 = vrot.slane %v1690_v32, 4 }
  0x7f   : > { %v2754_v30 = vrot.slane %v766_v58, 9  ;;  %v635_v2 = vld [vmem:[#allocation2 + $0x28] sm:$0xf]  ;;  %v706_v4 = vshrl.u32 %v634_v37, 16  ;;  %v709_v5 = vshll.u32 %v634_v37, 16  ;;  %v2220_v40 = vunpack.c.l.b16 %v1792_v35  ;;  %s3392_s19 = smov 8  }
  0x80   : > { %v807_v1 = vsel %vm3761_vm8, %v2753_v59, %v806_v60  ;;  %v720_v9 = vshrl.u32 %v635_v2, 16  ;;  %v723_v10 = vshll.u32 %v635_v2, 16  ;;  %v1695_v42 = vrot.slane %v1693_v33, 5  ;;  %v3782_v48 = vld [vmem:[#allocation2 + $0x7c] sm:$0x1]  ;;  %s3393_s5 = smov 24  }
  0x81   : > { %v811_v0 = vsel %vm3761_vm8, %v2754_v30, %v810_v62  ;;  %v1240_v3 = vunpack.c.l.b16 %v807_v1  ;;  %v708_v12 = vrot.slane %v706_v4, 4  ;;  %v711_v13 = vrot.slane %v709_v5, 5  ;;  %v2926_v53 = vld [vmem:[#allocation2 + $0x80] sm:$0xf]  ;;  %v3786_v58 = vld [vmem:[#allocation2 + $0x84] sm:$0x1] }
  0x82   : > { %v1241_v7 = vunpack.c.l.b16 %v811_v0  ;;  %v722_v18 = vrot.slane %v720_v9, 4  ;;  %v725_v19 = vrot.slane %v723_v10, 5  ;;  %v1707_v47 = vshll.u32 %v2894_v31, 16  ;;  %v2847_v37 = vld [vmem:[#allocation2 + $0x28] sm:$0xf]  ;;  %s3394_s7 = smov 32  }
  0x83   : > { %v712_v22 = vor.u32 %v711_v13, %v708_v12  ;;  %v2225_v51 = vpack.c.b16 %v2220_v40, %v2219_v36  ;;  %v1696_v52 = vor.u32 %v1695_v42, %v1692_v41  ;;  %v1706_v55 = vrot.slane %v1704_v46, 4  ;;  %v2761_v4 = vld [vmem:[#allocation2 + $0x28] sm:$0xf]  ;;  %v3792_v9 = vld [vmem:[#allocation2 + $0x2c] sm:$0x1]  ;;  %s3395_s8 = smov 48  }
  0x84   : > { %v1246_v17 = vpack.c.b16 %v1241_v7, %v1240_v3  ;;  %v726_v28 = vor.u32 %v725_v19, %v722_v18  ;;  %v1709_v56 = vrot.slane %v1707_v47, 5  ;;  %v1713_v57 = vshll.u32 %v2902_v11, 16  ;;  %v3072_v3 = vld [vmem:[#allocation2 + $0x2c] sm:$0xf0]  ;;  %v3796_v18 = vld [vmem:[#allocation2 + $0x34] sm:$0x1] }
  0x85   : > { %v713_v34 = vrot.slane %v712_v22, 4  ;;  %v1697_v59 = vrot.slane %v1696_v52, 4  ;;  %v1877_v60 = vshrl.u32 %v2925_v43, 16  ;;  %v1880_v30 = vshll.u32 %v2925_v43, 16  ;;  %v3801_v24 = vld [vmem:[#allocation2 + $0x30] sm:$0xf] }
  0x86   : > { %1252 = vrot.lane.b32.xlu1 %v1246_v17, %s3391_s10  ;;  %v727_v39 = vrot.slane %v726_v28, 4  ;;  %v1886_v62 = vshll.u32 %v3782_v48, 16  ;;  %v1710_v1 = vor.u32 %v1709_v56, %v1706_v55  ;;  %v1715_v2 = vrot.slane %v1713_v57, 5  ;;  %v2762_v17 = vld [vmem:[#allocation2 + $0x30] sm:$0xf]  ;;  %s3396_s9 = smov 40  }
  0x87   : > { %v718_v44 = vsel %vm3772_vm11, %v713_v34, %v717_v8  ;;  %v1891_v0 = vshrl.u32 %v2926_v53, 16  ;;  %v1702_v5 = vsel %vm3772_vm11, %v1697_v59, %v1701_v45  ;;  %v1879_v6 = vrot.slane %v1877_v60, 4  ;;  %v3803_v25 = vld [vmem:[#allocation2 + $0x34] sm:$0xf0]  ;;  %v3088_v38 = vld [vmem:[#allocation2 + $0x7c] sm:$0xf0] }
  0x88   : > { %v732_v49 = vsel %vm3772_vm11, %v727_v39, %v731_v23  ;;  %v1220_v50 = vunpack.c.l.b16 %v718_v44  ;;  %v1882_v7 = vrot.slane %v1880_v30, 5  ;;  %v1888_v8 = vrot.slane %v1886_v62, 5  ;;  %v3011_v32 = vld [vmem:[#allocation2 + $0x78] sm:$0xf]  ;;  %s3397_s11 = smov 56   ;;  %s3398_s23 = smov 64  }
  0x89   : > { %v1221_v54 = vunpack.c.l.b16 %v732_v49  ;;  %v1711_v10 = vrot.slane %v1710_v1, 4  ;;  %v2199_v11 = vunpack.c.l.b16 %v1702_v5  ;;  %v1893_v12 = vrot.slane %v1891_v0, 4  ;;  %v2941_v43 = vld [vmem:[#allocation2 + $0x78] sm:$0xe]  ;;  %v2942_v49 = vld [vmem:[#allocation2 + $0x80] sm:$0xe] }
  0x8a   : > { %v1894_v13 = vshll.u32 %v2926_v53, 16  ;;  %v1883_v14 = vor.u32 %v1882_v7, %v1879_v6  ;;  %v1900_v15 = vshll.u32 %v3786_v58, 16  ;;  %v2848_v16 = vor.u32 %v3072_v3, %v2847_v37  ;;  %v3820_v0 = vld [vmem:[#allocation2 + $0x34] sm:$0x1]  ;;  %s3062_s25 = sshll.u32 %s3374_s15, 3  ;;  %s2577_s15 = scalar_lea.sflag [#allocation6], %s3539_s28 }
  0x8b   : > { %v1226_v63 = vpack.c.b16 %v1221_v54, %v1220_v50  ;;  %v897_v19 = vshrl.u32 %v2761_v4, 16  ;;  %v1716_v20 = vsel %vm3772_vm11, %v1711_v10, %v1715_v2  ;;  %v900_v22 = vshll.u32 %v2761_v4, 16  ;;  %v2793_v54 = vld [vmem:[#allocation2 + $0x30] sm:$0xf]  ;;  %v2794_v2 = vld [vmem:[#allocation2 + $0x38] sm:$0xf]  ;;  %s2593_s29 = scalar_lea.hbm %s4406_s3, %s3062_s25 }
  0x8c   : > { %v1896_v21 = vrot.slane %v1894_v13, 5  ;;  %v906_v23 = vshll.u32 %v3792_v9, 16  ;;  %v2200_v26 = vunpack.c.l.b16 %v1716_v20  ;;  %v1884_v28 = vrot.slane %v1883_v14, 4  ;;  %1280 = vrot.lane.b32.xlu2 %v2848_v16, %s3393_s5  ;;  %v2777_v13 = vld [vmem:[#allocation2 + $0x28] sm:$0xe]  ;;  %s2596_s6 = sshll.u32 %s2593_s29, 4  ;;  %s2597_s6 = int_to_ptr.hbm [resolvable:$true] %s2596_s6 }
  0x8d   : > { %1232 = vrot.lane.b32.xlu0 %v1226_v63, %s3392_s19  ;;  %v1902_v29 = vrot.slane %v1900_v15, 5  ;;  %v899_v31 = vrot.slane %v897_v19, 4  ;;  %v902_v34 = vrot.slane %v900_v22, 5  ;;  %v911_v36 = vshrl.u32 %v2762_v17, 16 }
  0x8e   : > { %2231 = vrot.lane.b32.xlu1 %v2225_v51, %s3391_s10  ;;  %v1897_v33 = vor.u32 %v1896_v21, %v1893_v12  ;;  %v908_v35 = vrot.slane %v906_v23, 5  ;;  %v2205_v39 = vpack.c.b16 %v2200_v26, %v2199_v11  ;;  %v1889_v40 = vsel %vm3772_vm11, %v1884_v28, %v1888_v8  ;;  %v2778_v23 = vld [vmem:[#allocation2 + $0x30] sm:$0xe]  ;;  %v630_v26 = vld [vmem:[#allocation2] sm:$0xf] }
  0x8f   : > { %v914_v41 = vshll.u32 %v2762_v17, 16  ;;  %v920_v42 = vshll.u32 %v3796_v18, 16  ;;  %v2267_v45 = vunpack.c.l.b16 %v1889_v40  ;;  %v903_v46 = vor.u32 %v902_v34, %v899_v31 }
  0x90   : > { %v1898_v44 = vrot.slane %v1897_v33, 4  ;;  %v913_v47 = vrot.slane %v911_v36, 4  ;;  %v2864_v52 = vor.u32 %v3803_v25, %v3801_v24  ;;  %v3012_v53 = vor.u32 %v3088_v38, %v3011_v32  ;;  %v638_v33 = vld [vmem:[#allocation2 + $0x4] sm:$0x1] }
  0x91   : > { %v916_v50 = vrot.slane %v914_v41, 5  ;;  %v922_v51 = vrot.slane %v920_v42, 5  ;;  %v904_v56 = vrot.slane %v903_v46, 4  ;;  %v2949_v57 = vrot.slane %v2941_v43, 9  ;;  %v639_v46 = vld [vmem:[#allocation2 + $0xc] sm:$0x1] }
  0x92   : > { %v1903_v55 = vsel %vm3772_vm11, %v1898_v44, %v1902_v29  ;;  %v1974_v59 = vrot.slane %v3782_v48, 5  ;;  %v2950_v62 = vrot.slane %v2942_v49, 9  ;;  %v1978_v37 = vrot.slane %v3786_v58, 5  ;;  %v3825_v58 = vld [vmem:[#allocation2 + $0x3c] sm:$0x1] }
  0x93   : > { %v2268_v60 = vunpack.c.l.b16 %v1903_v55  ;;  %v917_v30 = vor.u32 %v916_v50, %v913_v47  ;;  %v909_v63 = vsel %vm3772_vm11, %v904_v56, %v908_v35  ;;  %v1085_v3 = vshrl.u32 %v2793_v54, 16 }
  0x94   : > { %v1975_v1 = vsel %vm3761_vm8, %v2949_v57, %v1974_v59  ;;  %v1088_v4 = vshll.u32 %v2793_v54, 16  ;;  %v1288_v7 = vunpack.c.l.b16 %v909_v63  ;;  %2259 = vrot.lane.b32.xlu2 %v3012_v53, %s3393_s5  ;;  %v1979_v48 = vsel %vm3761_vm8, %v2950_v62, %v1978_v37  ;;  %v762_v59 = vld [vmem:[#allocation2 + $0x8] sm:$0xe]  ;;  %v3027_v63 = vld [vmem:[#allocation2 + $0x80] sm:$0xf] }
  0x95   : > { %2211 = vrot.lane.b32.xlu0 %v2205_v39, %s3392_s19  ;;  %v2273_v5 = vpack.c.b16 %v2268_v60, %v2267_v45  ;;  %v918_v6 = vrot.slane %v917_v30, 4  ;;  %v2287_v8 = vunpack.c.l.b16 %v1975_v1  ;;  %v2288_v10 = vunpack.c.l.b16 %v1979_v48  ;;  %v631_v45 = vld [vmem:[#allocation2 + $0x8] sm:$0xf] }
  0x96   : > { %v1087_v11 = vrot.slane %v1085_v3, 4  ;;  %v1090_v12 = vrot.slane %v1088_v4, 5  ;;  %v1094_v15 = vshll.u32 %v3820_v0, 16  ;;  %v1099_v16 = vshrl.u32 %v2794_v2, 16 }
  0x97   : > { %2279 = vrot.lane.b32.xlu1 %v2273_v5, %s3394_s7  ;;  %v923_v14 = vsel %vm3772_vm11, %v918_v6, %v922_v51  ;;  %v1102_v17 = vshll.u32 %v2794_v2, 16  ;;  %v3831_v20 = vpack.c.b16 %v2288_v10, %v2287_v8  ;;  %v1108_v22 = vshll.u32 %v3825_v58, 16  ;;  %v3092_v5 = vld [vmem:[#allocation2 + $0x84] sm:$0xf0]  ;;  %v2957_v6 = vld [vmem:[#allocation2 + $0x80] sm:$0xf] }
  0x98   : > { %v1289_v19 = vunpack.c.l.b16 %v923_v14  ;;  %v1091_v21 = vor.u32 %v1090_v12, %v1087_v11  ;;  %v1096_v28 = vrot.slane %v1094_v15, 5  ;;  %v1101_v29 = vrot.slane %v1099_v16, 4  ;;  %v2958_v15 = vld [vmem:[#allocation2 + $0x88] sm:$0xf]  ;;  %v2965_v16 = vld [vmem:[#allocation2 + $0x84] sm:$0x1] }
  0x99   : > { %v1104_v31 = vrot.slane %v1102_v17, 5  ;;  %v2785_v32 = vrot.slane %v2777_v13, 9  ;;  %v1110_v36 = vrot.slane %v1108_v22, 5  ;;  %v994_v38 = vrot.slane %v3792_v9, 5 }
  0x9a   : > { %v1294_v34 = vpack.c.b16 %v1289_v19, %v1288_v7  ;;  %v1092_v35 = vrot.slane %v1091_v21, 4  ;;  %v2786_v40 = vrot.slane %v2778_v23, 9  ;;  %v998_v41 = vrot.slane %v3796_v18, 5  ;;  %v761_v18 = vld [vmem:[#allocation2] sm:$0xe] }
  0x9b   : > { %v1105_v39 = vor.u32 %v1104_v31, %v1101_v29  ;;  %v650_v42 = vshrl.u32 %v630_v26, 16  ;;  %v995_v44 = vsel %vm3761_vm8, %v2785_v32, %v994_v38  ;;  %v653_v47 = vshll.u32 %v630_v26, 16  ;;  %v2966_v23 = vld [vmem:[#allocation2 + $0x8c] sm:$0x1] }
  0x9c   : > { %v1097_v43 = vsel %vm3772_vm11, %v1092_v35, %v1096_v28  ;;  %v659_v49 = vshll.u32 %v638_v33, 16  ;;  %v999_v9 = vsel %vm3761_vm8, %v2786_v40, %v998_v41  ;;  %v1308_v53 = vunpack.c.l.b16 %v995_v44  ;;  %v2973_v28 = vld [vmem:[#allocation2 + $0x80] sm:$0xe] }
  0x9d   : > { %1300 = vrot.lane.b32.xlu0 %v1294_v34, %s3394_s7  ;;  %v1106_v50 = vrot.slane %v1105_v39, 4  ;;  %v1356_v51 = vunpack.c.l.b16 %v1097_v43  ;;  %v1309_v54 = vunpack.c.l.b16 %v999_v9  ;;  %v652_v55 = vrot.slane %v650_v42, 4  ;;  %v2974_v39 = vld [vmem:[#allocation2 + $0x88] sm:$0xe]  ;;  %v2889_v43 = vld [vmem:[#allocation2 + $0x50] sm:$0xf] }
  0x9e   : > { %v655_v56 = vrot.slane %v653_v47, 5  ;;  %v661_v57 = vrot.slane %v659_v49, 5  ;;  %v664_v30 = vshrl.u32 %v631_v45, 16  ;;  %v667_v62 = vshll.u32 %v631_v45, 16  ;;  %v2897_v49 = vld [vmem:[#allocation2 + $0x54] sm:$0x1] }
  0x9f   : > { %1348 = vrot.lane.b32.xlu1 %v2864_v52, %s3395_s8  ;;  %v1111_v60 = vsel %vm3772_vm11, %v1106_v50, %v1110_v36  ;;  %v673_v37 = vshll.u32 %v639_v46, 16  ;;  %v1314_v2 = vpack.c.b16 %v1309_v54, %v1308_v53  ;;  %v2749_v4 = vrot.slane %v761_v18, 9 }
  0xa0   : > { %v1357_v1 = vunpack.c.l.b16 %v1111_v60  ;;  %v656_v3 = vor.u32 %v655_v56, %v652_v55  ;;  %v666_v7 = vrot.slane %v664_v30, 4  ;;  %v669_v48 = vrot.slane %v667_v62, 5  ;;  %v2890_v60 = vld [vmem:[#allocation2 + $0x58] sm:$0xf]  ;;  %v2898_v30 = vld [vmem:[#allocation2 + $0x5c] sm:$0x1] }
  0xa1   : > { %v675_v8 = vrot.slane %v673_v37, 5  ;;  %v790_v10 = vrot.slane %v638_v33, 5  ;;  %1320 = vrot.lane.b32.xlu2 %v1314_v2, %s3396_s9  ;;  %v2750_v25 = vrot.slane %v762_v59, 9  ;;  %v794_v52 = vrot.slane %v639_v46, 5 }
  0xa2   : > { %v1362_v11 = vpack.c.b16 %v1357_v1, %v1356_v51  ;;  %v657_v24 = vrot.slane %v656_v3, 4  ;;  %v670_v12 = vor.u32 %v669_v48, %v666_v7  ;;  %v3028_v14 = vor.u32 %v3092_v5, %v3027_v63 }
  0xa3   : > { %v791_v13 = vsel %vm3761_vm8, %v2749_v4, %v790_v10  ;;  %v2064_v17 = vshrl.u32 %v2957_v6, 16  ;;  %v795_v21 = vsel %vm3761_vm8, %v2750_v25, %v794_v52  ;;  %v2067_v26 = vshll.u32 %v2957_v6, 16  ;;  %v2905_v4 = vld [vmem:[#allocation2 + $0x50] sm:$0xe]  ;;  %v2906_v25 = vld [vmem:[#allocation2 + $0x58] sm:$0xe] }
  0xa4   : > { %v662_v19 = vsel %vm3772_vm11, %v657_v24, %v661_v57  ;;  %v1236_v22 = vunpack.c.l.b16 %v791_v13  ;;  %v671_v29 = vrot.slane %v670_v12, 4  ;;  %v1237_v32 = vunpack.c.l.b16 %v795_v21 }
  0xa5   : > { %2299 = vrot.lane.b32.xlu0 %v3831_v20, %s3396_s9  ;;  %v1216_v31 = vunpack.c.l.b16 %v662_v19  ;;  %v2066_v33 = vrot.slane %v2064_v17, 4  ;;  %v2069_v34 = vrot.slane %v2067_v26, 5  ;;  %v2073_v35 = vshll.u32 %v2965_v16, 16 }
  0xa6   : > { %v2078_v36 = vshrl.u32 %v2958_v15, 16  ;;  %v2081_v38 = vshll.u32 %v2958_v15, 16  ;;  %v676_v20 = vsel %vm3772_vm11, %v671_v29, %v675_v8  ;;  %v1244_v40 = vpack.c.b16 %v1237_v32, %v1236_v22  ;;  %v2757_v15 = vld [vmem:[#allocation2 + $0x8] sm:$0xf]  ;;  %v3872_v22 = vld [vmem:[#allocation2 + $0xc] sm:$0x1] }
  0xa7   : > { %1368 = vrot.lane.b32.xlu1 %v1362_v11, %s3397_s11  ;;  %v2087_v41 = vshll.u32 %v2966_v23, 16  ;;  %v2981_v42 = vrot.slane %v2973_v28, 9  ;;  %v1217_v44 = vunpack.c.l.b16 %v676_v20  ;;  %v2070_v45 = vor.u32 %v2069_v34, %v2066_v33  ;;  %v2758_v33 = vld [vmem:[#allocation2 + $0x10] sm:$0xf]  ;;  %v3880_v20 = vld [vmem:[#allocation2 + $0x14] sm:$0x1] }
  0xa8   : > { %v2075_v46 = vrot.slane %v2073_v35, 5  ;;  %v2080_v47 = vrot.slane %v2078_v36, 4  ;;  %v2083_v50 = vrot.slane %v2081_v38, 5  ;;  %v2161_v9 = vrot.slane %v2965_v16, 5 }
  0xa9   : > { %v2089_v51 = vrot.slane %v2087_v41, 5  ;;  %v2982_v53 = vrot.slane %v2974_v39, 9  ;;  %v1224_v18 = vpack.c.b16 %v1217_v44, %v1216_v31  ;;  %2327 = vrot.lane.b32.xlu2 %v3028_v14, %s3395_s8  ;;  %v2071_v54 = vrot.slane %v2070_v45, 4  ;;  %v2809_v44 = vld [vmem:[#allocation2 + $0x30] sm:$0xe] }
  0xaa   : > { %v2165_v55 = vrot.slane %v2966_v23, 5  ;;  %v1634_v56 = vshrl.u32 %v2889_v43, 16  ;;  %v2084_v57 = vor.u32 %v2083_v50, %v2080_v47  ;;  %v2162_v59 = vsel %vm3761_vm8, %v2981_v42, %v2161_v9  ;;  %v2810_v50 = vld [vmem:[#allocation2 + $0x38] sm:$0xe] }
  0xab   : > { %v1637_v62 = vshll.u32 %v2889_v43, 16  ;;  %v1643_v37 = vshll.u32 %v2897_v49, 16  ;;  %v2076_v63 = vsel %vm3772_vm11, %v2071_v54, %v2075_v46  ;;  %v2355_v2 = vunpack.c.l.b16 %v2162_v59  ;;  %v3888_v59 = vld [vmem:[#allocation2 + $0x58] sm:$0xf] }
  0xac   : > { %v2166_v1 = vsel %vm3761_vm8, %v2982_v53, %v2165_v55  ;;  %v1636_v3 = vrot.slane %v1634_v56, 4  ;;  %v2085_v5 = vrot.slane %v2084_v57, 4  ;;  %v2335_v6 = vunpack.c.l.b16 %v2076_v63 }
  0xad   : > { %1228 = vrot.lane.b32.xlu0 %v1224_v18, %s3392_s19  ;;  %v2356_v7 = vunpack.c.l.b16 %v2166_v1  ;;  %v1639_v48 = vrot.slane %v1637_v62, 5  ;;  %v1645_v8 = vrot.slane %v1643_v37, 5  ;;  %v1648_v10 = vshrl.u32 %v2890_v60, 16 }
  0xae   : > { %v1651_v11 = vshll.u32 %v2890_v60, 16  ;;  %v1657_v24 = vshll.u32 %v2898_v30, 16  ;;  %v2090_v52 = vsel %vm3772_vm11, %v2085_v5, %v2089_v51  ;;  %v2913_v14 = vrot.slane %v2905_v4, 9  ;;  %v3890_v60 = vld [vmem:[#allocation2 + $0x5c] sm:$0x1] }
  0xaf   : > { %1248 = vrot.lane.b32.xlu1 %v1244_v40, %s3391_s10  ;;  %v2361_v12 = vpack.c.b16 %v2356_v7, %v2355_v2  ;;  %v1640_v13 = vor.u32 %v1639_v48, %v1636_v3  ;;  %v2336_v16 = vunpack.c.l.b16 %v2090_v52  ;;  %v1650_v17 = vrot.slane %v1648_v10, 4  ;;  %v2938_v2 = vld [vmem:[#allocation2 + $0x60] sm:$0xe]  ;;  %v3896_v10 = vld [vmem:[#allocation2 + $0x64] sm:$0x1] }
  0xb0   : > { %v1653_v19 = vrot.slane %v1651_v11, 5  ;;  %v1659_v21 = vrot.slane %v1657_v24, 5  ;;  %v1771_v26 = vrot.slane %v2897_v49, 5  ;;  %v2914_v28 = vrot.slane %v2906_v25, 9  ;;  %v3086_v7 = vld [vmem:[#allocation2 + $0x5c] sm:$0xf0] }
  0xb1   : > { %v1641_v23 = vrot.slane %v1640_v13, 4  ;;  %v1775_v29 = vrot.slane %v2898_v30, 5  ;;  %v2341_v31 = vpack.c.b16 %v2336_v16, %v2335_v6  ;;  %v841_v34 = vshrl.u32 %v2757_v15, 16  ;;  %v2937_v30 = vld [vmem:[#allocation2 + $0x58] sm:$0xe] }
  0xb2   : > { %v1654_v32 = vor.u32 %v1653_v19, %v1650_v17  ;;  %v844_v35 = vshll.u32 %v2757_v15, 16  ;;  %v1772_v38 = vsel %vm3761_vm8, %v2913_v14, %v1771_v26  ;;  %v850_v40 = vshll.u32 %v3872_v22, 16  ;;  %v2773_v25 = vld [vmem:[#allocation2 + $0x8] sm:$0xe]  ;;  %v2774_v13 = vld [vmem:[#allocation2 + $0x10] sm:$0xe] }
  0xb3   : > { %v1646_v36 = vsel %vm3772_vm11, %v1641_v23, %v1645_v8  ;;  %v1776_v39 = vsel %vm3761_vm8, %v2914_v28, %v1775_v29  ;;  %v2215_v42 = vunpack.c.l.b16 %v1772_v38  ;;  %v843_v46 = vrot.slane %v841_v34, 4  ;;  %v2789_v19 = vld [vmem:[#allocation2 + $0x10] sm:$0xf]  ;;  %v3909_v29 = vld [vmem:[#allocation2 + $0x14] sm:$0x1] }
  0xb4   : > { %v1655_v41 = vrot.slane %v1654_v32, 4  ;;  %v2216_v43 = vunpack.c.l.b16 %v1776_v39  ;;  %v2195_v45 = vunpack.c.l.b16 %v1646_v36  ;;  %v846_v47 = vrot.slane %v844_v35, 5  ;;  %v2790_v35 = vld [vmem:[#allocation2 + $0x18] sm:$0xf]  ;;  %v2839_v39 = vld [vmem:[#allocation2 + $0x8] sm:$0xf] }
  0xb5   : > { %2347 = vrot.lane.b32.xlu0 %v2341_v31, %s3397_s11  ;;  %v855_v49 = vshrl.u32 %v2758_v33, 16  ;;  %v852_v9 = vrot.slane %v850_v40, 5  ;;  %v858_v53 = vshll.u32 %v2758_v33, 16  ;;  %v864_v18 = vshll.u32 %v3880_v20, 16  ;;  %v3070_v40 = vld [vmem:[#allocation2 + $0xc] sm:$0xf0] }
  0xb6   : > { %v1660_v51 = vsel %vm3772_vm11, %v1655_v41, %v1659_v21  ;;  %v847_v55 = vor.u32 %v846_v47, %v843_v46  ;;  %v2817_v57 = vrot.slane %v2809_v44, 9  ;;  %v2223_v62 = vpack.c.b16 %v2216_v43, %v2215_v42  ;;  %v2921_v47 = vld [vmem:[#allocation2 + $0x58] sm:$0xf] }
  0xb7   : > { %2367 = vrot.lane.b32.xlu1 %v2361_v12, %s3398_s23  ;;  %v2196_v54 = vunpack.c.l.b16 %v1660_v51  ;;  %v857_v56 = vrot.slane %v855_v49, 4  ;;  %v860_v37 = vrot.slane %v858_v53, 5  ;;  %v1182_v63 = vrot.slane %v3820_v0, 5 }
  0xb8   : > { %v2818_v1 = vrot.slane %v2810_v50, 9  ;;  %v848_v4 = vrot.slane %v847_v55, 4  ;;  %v866_v5 = vrot.slane %v864_v18, 5  ;;  %v1186_v6 = vrot.slane %v3825_v58, 5 }
  0xb9   : > { %v2203_v3 = vpack.c.b16 %v2196_v54, %v2195_v45  ;;  %v861_v48 = vor.u32 %v860_v37, %v857_v56  ;;  %v1183_v8 = vsel %vm3761_vm8, %v2817_v57, %v1182_v63  ;;  %v2945_v11 = vrot.slane %v2937_v30, 9  ;;  %v3919_v45 = vld [vmem:[#allocation2 + $0x1c] sm:$0x1] }
  0xba   : > { %v1958_v24 = vrot.slane %v3890_v60, 5  ;;  %v853_v0 = vsel %vm3772_vm11, %v848_v4, %v852_v9  ;;  %v1187_v52 = vsel %vm3761_vm8, %v2818_v1, %v1186_v6  ;;  %v1376_v58 = vunpack.c.l.b16 %v1183_v8  ;;  %v3929_v6 = vld [vmem:[#allocation2 + $0x64] sm:$0x1] }
  0xbb   : > { %2207 = vrot.lane.b32.xlu2 %v2203_v3, %s3392_s19  ;;  %v2946_v12 = vrot.slane %v2938_v2, 9  ;;  %v862_v14 = vrot.slane %v861_v48, 4  ;;  %v1377_v15 = vunpack.c.l.b16 %v1187_v52  ;;  %v3004_v16 = vor.u32 %v3086_v7, %v3888_v59  ;;  %v2922_v59 = vld [vmem:[#allocation2 + $0x60] sm:$0xf] }
  0xbc   : > { %v1959_v17 = vsel %vm3761_vm8, %v2945_v11, %v1958_v24  ;;  %v1284_v21 = vunpack.c.l.b16 %v853_v0  ;;  %v1962_v23 = vrot.slane %v3896_v10, 5  ;;  %v2781_v28 = vrot.slane %v2773_v25, 9  ;;  %v2969_v7 = vld [vmem:[#allocation2 + $0x60] sm:$0xe]  ;;  %v3931_v25 = vld [vmem:[#allocation2 + $0x6c] sm:$0x1] }
  0xbd   : > { %2227 = vrot.lane.b32.xlu0 %v2223_v62, %s3391_s10  ;;  %v2283_v26 = vunpack.c.l.b16 %v1959_v17  ;;  %v867_v31 = vsel %vm3772_vm11, %v862_v14, %v866_v5  ;;  %v1382_v32 = vpack.c.b16 %v1377_v15, %v1376_v58  ;;  %v978_v33 = vrot.slane %v3872_v22, 5  ;;  %v2805_v17 = vld [vmem:[#allocation2 + $0x10] sm:$0xe] }
  0xbe   : > { %v2782_v34 = vrot.slane %v2774_v13, 9  ;;  %v1285_v36 = vunpack.c.l.b16 %v867_v31  ;;  %v1963_v38 = vsel %vm3761_vm8, %v2946_v12, %v1962_v23  ;;  %v982_v41 = vrot.slane %v3880_v20, 5  ;;  %v2970_v13 = vld [vmem:[#allocation2 + $0x68] sm:$0xe] }
  0xbf   : > { %v1029_v42 = vshrl.u32 %v2789_v19, 16  ;;  %v2284_v43 = vunpack.c.l.b16 %v1963_v38  ;;  %v979_v44 = vsel %vm3761_vm8, %v2781_v28, %v978_v33  ;;  %v1032_v46 = vshll.u32 %v2789_v19, 16  ;;  %v3090_v31 = vld [vmem:[#allocation2 + $0x64] sm:$0xf0]  ;;  %v2806_v38 = vld [vmem:[#allocation2 + $0x18] sm:$0xe] }
  0xc0   : > { %v1038_v22 = vshll.u32 %v3909_v29, 16  ;;  %v1292_v49 = vpack.c.b16 %v1285_v36, %v1284_v21  ;;  %v983_v50 = vsel %vm3761_vm8, %v2782_v34, %v982_v41  ;;  %v1304_v51 = vunpack.c.l.b16 %v979_v44  ;;  %v3949_v44 = vld [vmem:[#allocation2 + $0x34] sm:$0x1] }
  0xc1   : > { %v1031_v9 = vrot.slane %v1029_v42, 4  ;;  %v2291_v53 = vpack.c.b16 %v2284_v43, %v2283_v26  ;;  %v2840_v18 = vor.u32 %v3070_v40, %v2839_v39  ;;  %v1305_v20 = vunpack.c.l.b16 %v983_v50  ;;  %v3019_v26 = vld [vmem:[#allocation2 + $0x60] sm:$0xf] }
  0xc2   : > { %v1034_v54 = vrot.slane %v1032_v46, 5  ;;  %1296 = vrot.lane.b32.xlu1 %v1292_v49, %s3394_s7  ;;  %v1043_v55 = vshrl.u32 %v2790_v35, 16  ;;  %v1046_v56 = vshll.u32 %v2790_v35, 16  ;;  %v1052_v57 = vshll.u32 %v3919_v45, 16  ;;  %v767_v46 = vld [vmem:[#allocation2 + $0x30] sm:$0xe] }
  0xc3   : > { %1388 = vrot.lane.b32.xlu2 %v1382_v32, %s3398_s23  ;;  %v1821_v30 = vshrl.u32 %v2921_v47, 16  ;;  %v1040_v37 = vrot.slane %v1038_v22, 5  ;;  %v1824_v63 = vshll.u32 %v2921_v47, 16  ;;  %v1830_v1 = vshll.u32 %v3890_v60, 16 }
  0xc4   : > { %v1035_v62 = vor.u32 %v1034_v54, %v1031_v9  ;;  %v1312_v2 = vpack.c.b16 %v1305_v20, %v1304_v51  ;;  %v1045_v3 = vrot.slane %v1043_v55, 4  ;;  %v1048_v4 = vrot.slane %v1046_v56, 5  ;;  %v768_v51 = vld [vmem:[#allocation2 + $0x38] sm:$0xe]  ;;  %v2953_v9 = vld [vmem:[#allocation2 + $0x60] sm:$0xf] }
  0xc5   : > { %2255 = vrot.lane.b32.xlu0 %v3004_v16, %s3393_s5  ;;  %v1823_v5 = vrot.slane %v1821_v30, 4  ;;  %v1054_v8 = vrot.slane %v1052_v57, 5  ;;  %v1826_v11 = vrot.slane %v1824_v63, 5  ;;  %v1835_v24 = vshrl.u32 %v2922_v59, 16  ;;  %v3953_v55 = vld [vmem:[#allocation2 + $0x3c] sm:$0x1] }
  0xc6   : > { %v1036_v48 = vrot.slane %v1035_v62, 4  ;;  %v1049_v0 = vor.u32 %v1048_v4, %v1045_v3  ;;  %v1832_v52 = vrot.slane %v1830_v1, 5  ;;  %v1838_v58 = vshll.u32 %v2922_v59, 16  ;;  %v3957_v59 = vld [vmem:[#allocation2 + $0x10] sm:$0xf] }
  0xc7   : > { %v1844_v12 = vshll.u32 %v3896_v10, 16  ;;  %v1827_v14 = vor.u32 %v1826_v11, %v1823_v5  ;;  %v1837_v15 = vrot.slane %v1835_v24, 4  ;;  %v2977_v16 = vrot.slane %v2969_v7, 9  ;;  %v3074_v30 = vld [vmem:[#allocation2 + $0x14] sm:$0xf0] }
  0xc8   : > { %v1041_v60 = vsel %vm3772_vm11, %v1036_v48, %v1040_v37  ;;  %v1050_v19 = vrot.slane %v1049_v0, 4  ;;  %v1840_v23 = vrot.slane %v1838_v58, 5  ;;  %v2145_v32 = vrot.slane %v3929_v6, 5  ;;  %v2895_v0 = vld [vmem:[#allocation2 + $0x80] sm:$0xf] }
  0xc9   : > { %v1352_v21 = vunpack.c.l.b16 %v1041_v60  ;;  %v1828_v28 = vrot.slane %v1827_v14, 4  ;;  %v2978_v33 = vrot.slane %v2970_v13, 9  ;;  %v2149_v34 = vrot.slane %v3931_v25, 5  ;;  %v2896_v60 = vld [vmem:[#allocation2 + $0x88] sm:$0xf] }
  0xca   : > { %2295 = vrot.lane.b32.xlu1 %v2291_v53, %s3396_s9  ;;  %v1055_v10 = vsel %vm3772_vm11, %v1050_v19, %v1054_v8  ;;  %v1841_v35 = vor.u32 %v1840_v23, %v1837_v15  ;;  %v1846_v36 = vrot.slane %v1844_v12, 5  ;;  %v2813_v39 = vrot.slane %v2805_v17, 9  ;;  %v3975_v19 = vld [vmem:[#allocation2 + $0x84] sm:$0x1] }
  0xcb   : > { %1276 = vrot.lane.b32.xlu2 %v2840_v18, %s3393_s5  ;;  %v1353_v40 = vunpack.c.l.b16 %v1055_v10  ;;  %v1833_v41 = vsel %vm3772_vm11, %v1828_v28, %v1832_v52  ;;  %v2146_v42 = vsel %vm3761_vm8, %v2977_v16, %v2145_v32  ;;  %v2150_v43 = vsel %vm3761_vm8, %v2978_v33, %v2149_v34  ;;  %v3980_v33 = vld [vmem:[#allocation2 + $0x8c] sm:$0x1] }
  0xcc   : > { %v1842_v22 = vrot.slane %v1841_v35, 4  ;;  %v2263_v47 = vunpack.c.l.b16 %v1833_v41  ;;  %v3020_v49 = vor.u32 %v3090_v31, %v3019_v26  ;;  %v2351_v50 = vunpack.c.l.b16 %v2146_v42 }
  0xcd   : > { %1316 = vrot.lane.b32.xlu0 %v1312_v2, %s3396_s9  ;;  %v2352_v53 = vunpack.c.l.b16 %v2150_v43  ;;  %v1166_v18 = vrot.slane %v3909_v29, 5  ;;  %v2814_v20 = vrot.slane %v2806_v38, 9  ;;  %v1170_v54 = vrot.slane %v3919_v45, 5  ;;  %v2954_v2 = vld [vmem:[#allocation2 + $0x68] sm:$0xf] }
  0xce   : > { %v1360_v56 = vpack.c.b16 %v1353_v40, %v1352_v21  ;;  %v1847_v57 = vsel %vm3772_vm11, %v1842_v22, %v1846_v36  ;;  %v2755_v62 = vrot.slane %v767_v46, 9  ;;  %v814_v37 = vrot.slane %v3949_v44, 5  ;;  %v636_v43 = vld [vmem:[#allocation2 + $0x30] sm:$0xf] }
  0xcf   : > { %v2264_v63 = vunpack.c.l.b16 %v1847_v57  ;;  %v1167_v1 = vsel %vm3761_vm8, %v2813_v39, %v1166_v18  ;;  %v1171_v29 = vsel %vm3761_vm8, %v2814_v20, %v1170_v54  ;;  %v2756_v45 = vrot.slane %v768_v51, 9 }
  0xd0   : > { %v1372_v3 = vunpack.c.l.b16 %v1167_v1  ;;  %v1373_v4 = vunpack.c.l.b16 %v1171_v29  ;;  %v3966_v5 = vsel %vm3761_vm8, %v2755_v62, %v814_v37  ;;  %v818_v7 = vrot.slane %v3953_v55, 5 }
  0xd1   : > { %v2271_v48 = vpack.c.b16 %v2264_v63, %v2263_v47  ;;  %v2856_v8 = vor.u32 %v3074_v30, %v3957_v59  ;;  %v2008_v11 = vshrl.u32 %v2953_v9, 16  ;;  %v2011_v24 = vshll.u32 %v2953_v9, 16 }
  0xd2   : > { %1364 = vrot.lane.b32.xlu1 %v1360_v56, %s3397_s11  ;;  %v2359_v52 = vpack.c.b16 %v2352_v53, %v2351_v50  ;;  %v1242_v58 = vunpack.c.l.b16 %v3966_v5  ;;  %v2017_v12 = vshll.u32 %v3929_v6, 16  ;;  %v2022_v13 = vshrl.u32 %v2954_v2, 16  ;;  %v637_v53 = vld [vmem:[#allocation2 + $0x38] sm:$0xf]  ;;  %v3994_v5 = vld [vmem:[#allocation2 + $0x3c] sm:$0x1] }
  0xd3   : > { %2275 = vrot.lane.b32.xlu2 %v2271_v48, %s3394_s7  ;;  %v1380_v14 = vpack.c.b16 %v1373_v4, %v1372_v3  ;;  %v2010_v15 = vrot.slane %v2008_v11, 4  ;;  %v2013_v16 = vrot.slane %v2011_v24, 5  ;;  %v2025_v17 = vshll.u32 %v2954_v2, 16 }
  0xd4   : > { %v819_v21 = vsel %vm3761_vm8, %v2756_v45, %v818_v7  ;;  %v2024_v23 = vrot.slane %v2022_v13, 4  ;;  %v2031_v26 = vshll.u32 %v3931_v25, 16  ;;  %v1718_v28 = vshrl.u32 %v2895_v0, 16  ;;  %v2779_v7 = vld [vmem:[#allocation2 + $0x38] sm:$0xe] }
  0xd5   : > { %2323 = vrot.lane.b32.xlu0 %v3020_v49, %s3395_s8  ;;  %v2014_v6 = vor.u32 %v2013_v16, %v2010_v15  ;;  %v2019_v31 = vrot.slane %v2017_v12, 5  ;;  %v2027_v32 = vrot.slane %v2025_v17, 5  ;;  %v1721_v34 = vshll.u32 %v2895_v0, 16  ;;  %v3996_v0 = vld [vmem:[#allocation2 + $0x44] sm:$0x1] }
  0xd6   : > { %v2033_v10 = vrot.slane %v2031_v26, 5  ;;  %v1720_v35 = vrot.slane %v1718_v28, 4  ;;  %v1727_v36 = vshll.u32 %v3975_v19, 16  ;;  %v1732_v38 = vshrl.u32 %v2896_v60, 16 }
  0xd7   : > { %v2015_v39 = vrot.slane %v2014_v6, 4  ;;  %v2028_v40 = vor.u32 %v2027_v32, %v2024_v23  ;;  %v1723_v41 = vrot.slane %v1721_v34, 5  ;;  %v1735_v42 = vshll.u32 %v2896_v60, 16  ;;  %v2911_v60 = vld [vmem:[#allocation2 + $0x80] sm:$0xe] }
  0xd8   : > { %v1243_v46 = vunpack.c.l.b16 %v819_v21  ;;  %v1729_v22 = vrot.slane %v1727_v36, 5  ;;  %v1734_v25 = vrot.slane %v1732_v38, 4  ;;  %v1741_v47 = vshll.u32 %v3980_v33, 16  ;;  %v3015_v21 = vld [vmem:[#allocation2 + $0x88] sm:$0xf] }
  0xd9   : > { %v2020_v49 = vsel %vm3772_vm11, %v2015_v39, %v2019_v31  ;;  %v2029_v50 = vrot.slane %v2028_v40, 4  ;;  %v1724_v51 = vor.u32 %v1723_v41, %v1720_v35  ;;  %v1737_v9 = vrot.slane %v1735_v42, 5  ;;  %v2912_v31 = vld [vmem:[#allocation2 + $0x88] sm:$0xe]  ;;  %v4008_v36 = vld [vmem:[#allocation2 + $0x8c] sm:$0x1] }
  0xda   : > { %2363 = vrot.lane.b32.xlu1 %v2359_v52, %s3398_s23  ;;  %v2331_v18 = vunpack.c.l.b16 %v2020_v49  ;;  %v1743_v20 = vrot.slane %v1741_v47, 5  ;;  %v734_v54 = vshrl.u32 %v636_v43, 16  ;;  %v737_v56 = vshll.u32 %v636_v43, 16  ;;  %v2927_v35 = vld [vmem:[#allocation2 + $0x88] sm:$0xf] }
  0xdb   : > { %1344 = vrot.lane.b32.xlu2 %v2856_v8, %s3395_s8  ;;  %v2034_v57 = vsel %vm3772_vm11, %v2029_v50, %v2033_v10  ;;  %v1725_v59 = vrot.slane %v1724_v51, 4  ;;  %v1738_v30 = vor.u32 %v1737_v9, %v1734_v25  ;;  %v743_v62 = vshll.u32 %v3949_v44, 16  ;;  %v2780_v44 = vld [vmem:[#allocation2 + $0x40] sm:$0xe]  ;;  %v3089_v38 = vld [vmem:[#allocation2 + $0x8c] sm:$0xf0] }
  0xdc   : > { %v2332_v37 = vunpack.c.l.b16 %v2034_v57  ;;  %v736_v63 = vrot.slane %v734_v54, 4  ;;  %v739_v1 = vrot.slane %v737_v56, 5  ;;  %v748_v29 = vshrl.u32 %v637_v53, 16  ;;  %v2851_v41 = vld [vmem:[#allocation2 + $0x38] sm:$0xf] }
  0xdd   : > { %1384 = vrot.lane.b32.xlu0 %v1380_v14, %s3398_s23  ;;  %v1247_v45 = vpack.c.b16 %v1243_v46, %v1242_v58  ;;  %v1730_v2 = vsel %vm3772_vm11, %v1725_v59, %v1729_v22  ;;  %v1739_v3 = vrot.slane %v1738_v30, 4  ;;  %v751_v4 = vshll.u32 %v637_v53, 16  ;;  %v3073_v46 = vld [vmem:[#allocation2 + $0x3c] sm:$0xf0]  ;;  %v2928_v51 = vld [vmem:[#allocation2 + $0x90] sm:$0xf] }
  0xde   : > { %v2201_v48 = vunpack.c.l.b16 %v1730_v2  ;;  %v740_v8 = vor.u32 %v739_v1, %v736_v63  ;;  %v745_v11 = vrot.slane %v743_v62, 5  ;;  %v750_v24 = vrot.slane %v748_v29, 4  ;;  %v2764_v2 = vld [vmem:[#allocation2 + $0x40] sm:$0xf] }
  0xdf   : > { %v2339_v52 = vpack.c.b16 %v2332_v37, %v2331_v18  ;;  %v1744_v12 = vsel %vm3772_vm11, %v1739_v3, %v1743_v20  ;;  %v753_v58 = vrot.slane %v751_v4, 5  ;;  %v757_v13 = vshll.u32 %v3953_v55, 16  ;;  %v2763_v37 = vld [vmem:[#allocation2 + $0x38] sm:$0xf] }
  0xe0   : > { %v2202_v14 = vunpack.c.l.b16 %v1744_v12  ;;  %v741_v15 = vrot.slane %v740_v8, 4  ;;  %v2787_v16 = vrot.slane %v2779_v7, 9  ;;  %v1002_v17 = vrot.slane %v3994_v5, 5 }
  0xe1   : > { %v754_v23 = vor.u32 %v753_v58, %v750_v24  ;;  %v759_v26 = vrot.slane %v757_v13, 5  ;;  %v2788_v28 = vrot.slane %v2780_v44, 9  ;;  %v1006_v6 = vrot.slane %v3996_v0, 5 }
  0xe2   : > { %1254 = vrot.lane.b32.xlu1 %v1247_v45, %s3391_s10  ;;  %v2206_v32 = vpack.c.b16 %v2202_v14, %v2201_v48  ;;  %v746_v34 = vsel %vm3772_vm11, %v741_v15, %v745_v11  ;;  %v1003_v55 = vsel %vm3761_vm8, %v2787_v16, %v1002_v17  ;;  %v2919_v10 = vrot.slane %v2911_v60, 9 }
  0xe3   : > { %2343 = vrot.lane.b32.xlu2 %v2339_v52, %s3397_s11  ;;  %v755_v39 = vrot.slane %v754_v23, 4  ;;  %v1222_v40 = vunpack.c.l.b16 %v746_v34  ;;  %v1007_v42 = vsel %vm3761_vm8, %v2788_v28, %v1006_v6  ;;  %v1310_v43 = vunpack.c.l.b16 %v1003_v55 }
  0xe4   : > { %v1311_v22 = vunpack.c.l.b16 %v1007_v42  ;;  %v1795_v25 = vrot.slane %v3975_v19, 5  ;;  %v2920_v47 = vrot.slane %v2912_v31, 9  ;;  %v1799_v49 = vrot.slane %v3980_v33, 5  ;;  %v4023_v19 = vld [vmem:[#allocation2 + $0x94] sm:$0x1] }
  0xe5   : > { %2213 = vrot.lane.b32.xlu0 %v2206_v32, %s3392_s19  ;;  %v760_v50 = vsel %vm3772_vm11, %v755_v39, %v759_v26  ;;  %v1905_v9 = vshrl.u32 %v2927_v35, 16  ;;  %v1908_v53 = vshll.u32 %v2927_v35, 16  ;;  %v1914_v18 = vshll.u32 %v4008_v36, 16  ;;  %v4035_v31 = vld [vmem:[#allocation2 + $0x64] sm:$0x1] }
  0xe6   : > { %v3016_v20 = vor.u32 %v3089_v38, %v3015_v21  ;;  %v1223_v54 = vunpack.c.l.b16 %v760_v50  ;;  %v1796_v56 = vsel %vm3761_vm8, %v2919_v10, %v1795_v25  ;;  %v1800_v57 = vsel %vm3761_vm8, %v2920_v47, %v1799_v49  ;;  %v4030_v60 = vpop.permute.xlu2 %1280  ;;  %v2891_v21 = vld [vmem:[#allocation2 + $0x60] sm:$0xf]  ;;  %v2892_v10 = vld [vmem:[#allocation2 + $0x68] sm:$0xf]  ;;  %v3031_v42 = vld [vmem:[#allocation2 + $0x90] sm:$0xf] }
  0xe7   : > { %v2852_v59 = vor.u32 %v3073_v46, %v2851_v41  ;;  %v1315_v33 = vpack.c.b16 %v1311_v22, %v1310_v43  ;;  %v1907_v30 = vrot.slane %v1905_v9, 4  ;;  %v1910_v62 = vrot.slane %v1908_v53, 5  ;;  %v3093_v43 = vld [vmem:[#allocation2 + $0x94] sm:$0xf0]  ;;  %v4039_v25 = vld [vmem:[#allocation2 + $0x6c] sm:$0x1] }
  0xe8   : > { %v1227_v63 = vpack.c.b16 %v1223_v54, %v1222_v40  ;;  %v2221_v1 = vunpack.c.l.b16 %v1796_v56  ;;  %v1919_v29 = vshrl.u32 %v2928_v51, 16  ;;  %v1922_v45 = vshll.u32 %v2928_v51, 16  ;;  %v4042_v49 = vld [vmem:[#allocation2 + $0x40] sm:$0xf] }
  0xe9   : > { %v2222_v3 = vunpack.c.l.b16 %v1800_v57  ;;  %v1911_v4 = vor.u32 %v1910_v62, %v1907_v30  ;;  %v1916_v7 = vrot.slane %v1914_v18, 5  ;;  %v1928_v48 = vshll.u32 %v4023_v19, 16 }
  0xea   : > { %2261 = vrot.lane.b32.xlu1 %v3016_v20, %s3393_s5  ;;  %v1921_v8 = vrot.slane %v1919_v29, 4  ;;  %v1924_v11 = vrot.slane %v1922_v45, 5  ;;  %v925_v24 = vshrl.u32 %v2763_v37, 16  ;;  %v928_v44 = vshll.u32 %v2763_v37, 16  ;;  %v3077_v20 = vld [vmem:[#allocation2 + $0x44] sm:$0xf0] }
  0xeb   : > { %1234 = vrot.lane.b32.xlu2 %v1227_v63, %s3392_s19  ;;  %v1912_v52 = vrot.slane %v1911_v4, 4  ;;  %v1930_v12 = vrot.slane %v1928_v48, 5  ;;  %v934_v58 = vshll.u32 %v3994_v5, 16  ;;  %v939_v13 = vshrl.u32 %v2764_v2, 16  ;;  %v2943_v37 = vld [vmem:[#allocation2 + $0x88] sm:$0xe] }
  0xec   : > { %v1925_v14 = vor.u32 %v1924_v11, %v1921_v8  ;;  %v927_v15 = vrot.slane %v925_v24, 4  ;;  %v930_v16 = vrot.slane %v928_v44, 5  ;;  %v942_v17 = vshll.u32 %v2764_v2, 16  ;;  %v2944_v45 = vld [vmem:[#allocation2 + $0x90] sm:$0xe] }
  0xed   : > { %1282 = vrot.lane.b32.xlu0 %v2852_v59, %s3393_s5  ;;  %v2226_v23 = vpack.c.b16 %v2222_v3, %v2221_v1  ;;  %v1917_v26 = vsel %vm3772_vm11, %v1912_v52, %v1916_v7  ;;  %v941_v28 = vrot.slane %v939_v13, 4  ;;  %v948_v6 = vshll.u32 %v3996_v0, 16  ;;  %v2795_v48 = vld [vmem:[#allocation2 + $0x40] sm:$0xf] }
  0xee   : > { %v1926_v5 = vrot.slane %v1925_v14, 4  ;;  %v931_v32 = vor.u32 %v930_v16, %v927_v15  ;;  %v936_v34 = vrot.slane %v934_v58, 5  ;;  %v944_v55 = vrot.slane %v942_v17, 5  ;;  %v4055_v8 = vpop.permute.xlu2 %2259  ;;  %v2796_v16 = vld [vmem:[#allocation2 + $0x48] sm:$0xf] }
  0xef   : > { %v2269_v35 = vunpack.c.l.b16 %v1917_v26  ;;  %v950_v38 = vrot.slane %v948_v6, 5  ;;  %v1662_v39 = vshrl.u32 %v2891_v21, 16  ;;  %v1665_v40 = vshll.u32 %v2891_v21, 16  ;;  %v2804_v26 = vld [vmem:[#allocation2 + $0x4c] sm:$0x1] }
  0xf0   : > { %v1931_v41 = vsel %vm3772_vm11, %v1926_v5, %v1930_v12  ;;  %v932_v46 = vrot.slane %v931_v32, 4  ;;  %v945_v22 = vor.u32 %v944_v55, %v941_v28  ;;  %v1671_v0 = vshll.u32 %v4035_v31, 16  ;;  %v2803_v12 = vld [vmem:[#allocation2 + $0x44] sm:$0x1]  ;;  %v4063_v6 = vld [vmem:[#allocation2 + $0x20] sm:$0xf] }
  0xf1   : > { %v2270_v47 = vunpack.c.l.b16 %v1931_v41  ;;  %v1664_v50 = vrot.slane %v1662_v39, 4  ;;  %v1667_v51 = vrot.slane %v1665_v40, 5  ;;  %v1676_v9 = vshrl.u32 %v2892_v10, 16  ;;  %v3068_v5 = vld [vmem:[#allocation2 + $0x24] sm:$0xf0] }
  0xf2   : > { %1322 = vrot.lane.b32.xlu1 %v1315_v33, %s3396_s9  ;;  %v937_v53 = vsel %vm3772_vm11, %v932_v46, %v936_v34  ;;  %v946_v18 = vrot.slane %v945_v22, 4  ;;  %v1673_v54 = vrot.slane %v1671_v0, 5  ;;  %v1679_v56 = vshll.u32 %v2892_v10, 16  ;;  %v2812_v46 = vld [vmem:[#allocation2 + $0x48] sm:$0xe] }
  0xf3   : > { %2233 = vrot.lane.b32.xlu2 %v2226_v23, %s3391_s10  ;;  %v2274_v57 = vpack.c.b16 %v2270_v47, %v2269_v35  ;;  %v1290_v59 = vunpack.c.l.b16 %v937_v53  ;;  %v1668_v30 = vor.u32 %v1667_v51, %v1664_v50  ;;  %v1678_v62 = vrot.slane %v1676_v9, 4  ;;  %v632_v53 = vld [vmem:[#allocation2 + $0x10] sm:$0xf] }
  0xf4   : > { %v951_v63 = vsel %vm3772_vm11, %v946_v18, %v950_v38  ;;  %v1681_v33 = vrot.slane %v1679_v56, 5  ;;  %v1685_v29 = vshll.u32 %v4039_v25, 16  ;;  %v3032_v2 = vor.u32 %v3093_v43, %v3031_v42  ;;  %v2811_v43 = vld [vmem:[#allocation2 + $0x40] sm:$0xe]  ;;  %v4073_v18 = vld [vmem:[#allocation2 + $0x14] sm:$0x1] }
  0xf5   : > { %2281 = vrot.lane.b32.xlu0 %v2274_v57, %s3394_s7  ;;  %v1291_v3 = vunpack.c.l.b16 %v951_v63  ;;  %v2868_v4 = vor.u32 %v3077_v20, %v4042_v49  ;;  %v1669_v7 = vrot.slane %v1668_v30, 4  ;;  %v2951_v44 = vrot.slane %v2943_v37, 9 }
  0xf6   : > { %v1682_v11 = vor.u32 %v1681_v33, %v1678_v62  ;;  %v1687_v24 = vrot.slane %v1685_v29, 5  ;;  %v1982_v52 = vrot.slane %v4008_v36, 5  ;;  %v2952_v14 = vrot.slane %v2944_v45, 9  ;;  %v633_v45 = vld [vmem:[#allocation2 + $0x18] sm:$0xf] }
  0xf7   : > { %v1295_v58 = vpack.c.b16 %v1291_v3, %v1290_v59  ;;  %v1674_v13 = vsel %vm3772_vm11, %v1669_v7, %v1673_v54  ;;  %v1986_v15 = vrot.slane %v4023_v19, 5  ;;  %v1113_v28 = vshrl.u32 %v2795_v48, 16 }
  0xf8   : > { %v4050_v1 = vpop.permute.xlu1 %1252  ;;  %v1683_v17 = vrot.slane %v1682_v11, 4  ;;  %v2197_v21 = vunpack.c.l.b16 %v1674_v13  ;;  %v1983_v23 = vsel %vm3761_vm8, %v2951_v44, %v1982_v52  ;;  %v1116_v34 = vshll.u32 %v2795_v48, 16 }
  0xf9   : > { %v1987_v36 = vsel %vm3761_vm8, %v2952_v14, %v1986_v15  ;;  %v2289_v32 = vunpack.c.l.b16 %v1983_v23  ;;  %v1122_v55 = vshll.u32 %v2803_v12, 16  ;;  %v1115_v35 = vrot.slane %v1113_v28, 4  ;;  %v4094_v28 = vld [vmem:[#allocation2 + $0x70] sm:$0xf] }
  0xfa   : > { %2329 = vrot.lane.b32.xlu1 %v3032_v2, %s3395_s8  ;;  %v1688_v19 = vsel %vm3772_vm11, %v1683_v17, %v1687_v24  ;;  %v2290_v10 = vunpack.c.l.b16 %v1987_v36  ;;  %v1127_v38 = vshrl.u32 %v2796_v16, 16  ;;  %v1118_v41 = vrot.slane %v1116_v34, 5 }
  0xfb   : > { %1302 = vrot.lane.b32.xlu2 %v1295_v58, %s3394_s7  ;;  %v2198_v39 = vunpack.c.l.b16 %v1688_v19  ;;  %v1130_v42 = vshll.u32 %v2796_v16, 16  ;;  %v2832_v22 = vor.u32 %v3068_v5, %v4063_v6  ;;  %vm1392_vm12 = vcmask 64512   ;;  %v4077_v33 = vpop.permute.xlu2 %1320  ;;  %v4096_v6 = vld [vmem:[#allocation2 + $0x74] sm:$0xf0]  ;;  %v763_v19 = vld [vmem:[#allocation2 + $0x10] sm:$0xe] }
  0xfc   : > { %v1129_v0 = vrot.slane %v1127_v38, 4  ;;  %v1136_v47 = vshll.u32 %v2804_v26, 16  ;;  %v2294_v49 = vpack.c.b16 %v2290_v10, %v2289_v32  ;;  %v1119_v50 = vor.u32 %v1118_v41, %v1115_v35 }
  0xfd   : > { %1350 = vrot.lane.b32.xlu0 %v2868_v4, %s3395_s8  ;;  %v1124_v51 = vrot.slane %v1122_v55, 5  ;;  %v1132_v9 = vrot.slane %v1130_v42, 5  ;;  %v2204_v20 = vpack.c.b16 %v2198_v39, %v2197_v21  ;;  %v2819_v56 = vrot.slane %v2811_v43, 9  ;;  %v1484_v21 = vld [vmem:[%s3542_s30 + $0x20] sm:$0xf] }
  0xfe   : > { %v1190_v57 = vrot.slane %v2803_v12, 5  ;;  %v2820_v59 = vrot.slane %v2812_v46, 9  ;;  %v1120_v30 = vrot.slane %v1119_v50, 4  ;;  %v1138_v37 = vrot.slane %v1136_v47, 5  ;;  %v641_v12 = vld [vmem:[#allocation2 + $0x1c] sm:$0x1] }
  0xff   : > { %v1233_v40 = vpop.permute.xlu0 %1232  ;;  %v1133_v62 = vor.u32 %v1132_v9, %v1129_v0  ;;  %v1194_v63 = vrot.slane %v2804_v26, 5  ;;  %v678_v2 = vshrl.u32 %v632_v53, 16  ;;  %v681_v3 = vshll.u32 %v632_v53, 16  ;;  %v764_v43 = vld [vmem:[#allocation2 + $0x18] sm:$0xe] }
 0x100   : > { %v4075_v54 = vpop.permute.xlu1 %2231  ;;  %v1191_v29 = vsel %vm3761_vm8, %v2819_v56, %v1190_v57  ;;  %v687_v4 = vshll.u32 %v4073_v18, 16  ;;  %v1125_v7 = vsel %vm3772_vm11, %v1120_v30, %v1124_v51  ;;  %vm1405_vm13 = vcmask 130048   ;;  %v2959_v46 = vld [vmem:[#allocation2 + $0x90] sm:$0xf]  ;;  %v2843_v51 = vld [vmem:[#allocation2 + $0x18] sm:$0xf] }
 0x101   : > { %v1134_v48 = vrot.slane %v1133_v62, 4  ;;  %v1195_v11 = vsel %vm3761_vm8, %v2820_v59, %v1194_v63  ;;  %v1378_v24 = vunpack.c.l.b16 %v1191_v29  ;;  %v1358_v44 = vunpack.c.l.b16 %v1125_v7  ;;  %v3081_v29 = vld [vmem:[%s3542_s30 + $0x18] sm:$0xff] }
 0x102   : > { %2209 = vrot.lane.b32.xlu1 %v2204_v20, %s3392_s19  ;;  %v1379_v52 = vunpack.c.l.b16 %v1195_v11  ;;  %v680_v58 = vrot.slane %v678_v2, 4  ;;  %v683_v13 = vrot.slane %v681_v3, 5  ;;  %v692_v16 = vshrl.u32 %v633_v45, 16  ;;  %v2960_v20 = vld [vmem:[#allocation2 + $0x98] sm:$0xf] }
 0x103   : > { %2301 = vrot.lane.b32.xlu2 %v2294_v49, %s3396_s9  ;;  %v1139_v14 = vsel %vm3772_vm11, %v1134_v48, %v1138_v37  ;;  %v695_v17 = vshll.u32 %v633_v45, 16  ;;  %v1401_v23 = vsel %vm1392_vm12, %v2832_v22, %v1233_v40  ;;  %v689_v36 = vrot.slane %v687_v4, 5  ;;  %v4110_v59 = vpop.permute.xlu2 %2327  ;;  %v2967_v37 = vld [vmem:[#allocation2 + $0x94] sm:$0x1]  ;;  %v2968_v48 = vld [vmem:[#allocation2 + $0x9c] sm:$0x1] }
 0x104   : > { %v1359_v26 = vunpack.c.l.b16 %v1139_v14  ;;  %v684_v5 = vor.u32 %v683_v13, %v680_v58  ;;  %v694_v32 = vrot.slane %v692_v16, 4  ;;  %v701_v55 = vshll.u32 %v641_v12, 16 }
 0x105   : > { %v697_v34 = vrot.slane %v695_v17, 5  ;;  %v1383_v35 = vpack.c.b16 %v1379_v52, %v1378_v24  ;;  %v1502_v39 = vunpack.c.l.b16 %v1484_v21  ;;  %v1411_v41 = vsel %vm1405_vm13, %v1401_v23, %v4050_v1  ;;  %v3071_v1 = vld [vmem:[#allocation2 + $0x1c] sm:$0xf0]  ;;  %v2975_v21 = vld [vmem:[#allocation2 + $0x90] sm:$0xe] }
 0x106   : > { %v1363_v10 = vpack.c.b16 %v1359_v26, %v1358_v44  ;;  %v685_v38 = vrot.slane %v684_v5, 4  ;;  %v703_v40 = vrot.slane %v701_v55, 5  ;;  %vm1521_vm14 = vcmask 1043456   ;;  %v3080_v5 = vld [vmem:[%s3542_s30 + $0x10] sm:$0xff] }
 0x107   : > { %v4090_v15 = vpop.permute.xlu0 %2211  ;;  %v698_v42 = vor.u32 %v697_v34, %v694_v32  ;;  %v2996_v22 = vor.u32 %v4096_v6, %v4094_v28  ;;  %v1507_v47 = vpack.c.b16 %v1502_v39, %v1502_v39  ;;  %v2751_v50 = vrot.slane %v763_v19, 9  ;;  %v2976_v19 = vld [vmem:[#allocation2 + $0x98] sm:$0xe]  ;;  %v4127_v39 = vld [vmem:[#allocation2 + $0x6c] sm:$0x1] }
 0x108   : > { %1370 = vrot.lane.b32.xlu0 %v1363_v10, %s3397_s11  ;;  %v690_v0 = vsel %vm3772_vm11, %v685_v38, %v689_v36  ;;  %vm1414_vm15 = vcmask 195584   ;;  %vm1423_vm0 = vcmask 261120   ;;  %v798_v53 = vrot.slane %v4073_v18, 5  ;;  %v2923_v36 = vld [vmem:[#allocation2 + $0x68] sm:$0xf] }
 0x109   : > { %v4105_v49 = vpop.permute.xlu1 %2279  ;;  %v699_v9 = vrot.slane %v698_v42, 4  ;;  %v1218_v56 = vunpack.c.l.b16 %v690_v0  ;;  %v1523_v57 = vsel %vm1521_vm14, %v1507_v47, 0  ;;  %v2752_v30 = vrot.slane %v764_v43, 9 }
 0x10a   : > { %1390 = vrot.lane.b32.xlu1 %v1383_v35, %s3398_s23  ;;  %v802_v62 = vrot.slane %v641_v12, 5  ;;  %3098 = vmatpush.bf16.msra.mxu2 %v1523_v57  ;;  %v799_v45 = vsel %vm3761_vm8, %v2751_v50, %v798_v53  ;;  %v2844_v18 = vor.u32 %v3071_v1, %v2843_v51  ;;  %v2092_v2 = vshrl.u32 %v2959_v46, 16  ;;  %v2924_v53 = vld [vmem:[#allocation2 + $0x70] sm:$0xf] }
 0x10b   : > { %v704_v63 = vsel %vm3772_vm11, %v699_v9, %v703_v40  ;;  %1528 = vmatpush.bf16.msra.mxu0 %v1523_v57  ;;  %v1238_v7 = vunpack.c.l.b16 %v799_v45  ;;  %v2095_v11 = vshll.u32 %v2959_v46, 16  ;;  %v2101_v12 = vshll.u32 %v2967_v37, 16  ;;  %v3079_v46 = vld [vmem:[%s3542_s30 + $0x8] sm:$0xff] }
 0x10c   : > { %v1219_v3 = vunpack.c.l.b16 %v704_v63  ;;  %v803_v4 = vsel %vm3761_vm8, %v2752_v30, %v802_v62  ;;  %v2094_v52 = vrot.slane %v2092_v2, 4  ;;  %v2106_v58 = vshrl.u32 %v2960_v20, 16  ;;  %v4146_v62 = vld [vmem:[#allocation2 + $0x74] sm:$0x1]  ;;  %v2455_v2 = vld [vmem:[%s3542_s30 + $0x20] sm:$0xf] }
 0x10d   : > { %v1239_v24 = vunpack.c.l.b16 %v803_v4  ;;  %v1420_v14 = vsel %vm1414_vm15, %v1411_v41, %v4030_v60  ;;  %v2097_v16 = vrot.slane %v2095_v11, 5  ;;  %v2109_v17 = vshll.u32 %v2960_v20, 16 }
 0x10e   : > { %v1225_v13 = vpack.c.b16 %v1219_v3, %v1218_v56  ;;  %3099 = vmatpush.bf16.msra.mxu2 %v3081_v29  ;;  %v2108_v28 = vrot.slane %v2106_v58, 4  ;;  %v2115_v6 = vshll.u32 %v2968_v48, 16  ;;  %v2103_v34 = vrot.slane %v2101_v12, 5 }
 0x10f   : > { %v1301_v44 = vpop.permute.xlu0 %1300  ;;  %v1245_v23 = vpack.c.b16 %v1239_v24, %v1238_v7  ;;  %1529 = vmatpush.bf16.msra.mxu0 %v3081_v29  ;;  %v2098_v32 = vor.u32 %v2097_v16, %v2094_v52  ;;  %v2111_v55 = vrot.slane %v2109_v17, 5  ;;  %vm1432_vm1 = vcmask 326656   ;;  %v2759_v17 = vld [vmem:[#allocation2 + $0x18] sm:$0xf] }
 0x110   : > { %v1429_v26 = vsel %vm1423_vm0, %v1420_v14, %v1301_v44  ;;  %1230 = vrot.lane.b32.xlu2 %v1225_v13, %s3392_s19  ;;  %v2379_v10 = vsel %vm1392_vm12, %v2996_v22, %v4090_v15  ;;  %v2117_v35 = vrot.slane %v2115_v6, 5  ;;  %vm1441_vm2 = vcmask 392192  }
 0x111   : > { %v1349_v60 = vpop.permute.xlu1 %1348  ;;  %1250 = vrot.lane.b32.xlu0 %v1245_v23, %s3391_s10  ;;  %v2983_v38 = vrot.slane %v2975_v21, 9  ;;  %v2099_v41 = vrot.slane %v2098_v32, 4  ;;  %v2112_v42 = vor.u32 %v2111_v55, %v2108_v28  ;;  %v1438_v40 = vsel %vm1432_vm1, %v1429_v26, %v4077_v33  ;;  %v4156_v21 = vld [vmem:[#allocation2 + $0x1c] sm:$0x1]  ;;  %v4161_v32 = vld [vmem:[#allocation2 + $0x24] sm:$0x1] }
 0x112   : > { %1278 = vrot.lane.b32.xlu1 %v2844_v18, %s3393_s5  ;;  %v2169_v43 = vrot.slane %v2967_v37, 5  ;;  %3100 = vmatpush.bf16.msra.mxu2 %v3080_v5  ;;  %v2984_v0 = vrot.slane %v2976_v19, 9  ;;  %v2173_v47 = vrot.slane %v2968_v48, 5  ;;  %v1849_v15 = vshrl.u32 %v2923_v36, 16  ;;  %v3078_v48 = vld [vmem:[%s3542_s30] sm:$0xff] }
 0x113   : > { %v1852_v22 = vshll.u32 %v2923_v36, 16  ;;  %1530 = vmatpush.bf16.msra.mxu0 %v3080_v5  ;;  %v2104_v50 = vsel %vm3772_vm11, %v2099_v41, %v2103_v34  ;;  %v2113_v51 = vrot.slane %v2112_v42, 4  ;;  %v1858_v33 = vshll.u32 %v4127_v39, 16  ;;  %v2760_v36 = vld [vmem:[#allocation2 + $0x20] sm:$0xf] }
 0x114   : > { %v2170_v9 = vsel %vm3761_vm8, %v2983_v38, %v2169_v43  ;;  %v4142_v20 = vsel %vm1405_vm13, %v2379_v10, %v4075_v54  ;;  %v2337_v56 = vunpack.c.l.b16 %v2104_v50  ;;  %v2174_v57 = vsel %vm3761_vm8, %v2984_v0, %v2173_v47  ;;  %v3097_v43 = vld [vmem:[%s3542_s30 + $0x18] sm:$0xff]  ;;  %v2908_v50 = vld [vmem:[#allocation2 + $0x68] sm:$0xe] }
 0x115   : > { %v4135_v1 = vpop.permute.xlu2 %2207  ;;  %v2357_v30 = vunpack.c.l.b16 %v2170_v9  ;;  %v2118_v63 = vsel %vm3772_vm11, %v2113_v51, %v2117_v35  ;;  %v2358_v29 = vunpack.c.l.b16 %v2174_v57  ;;  %v1851_v45 = vrot.slane %v1849_v15, 4  ;;  %v2907_v35 = vld [vmem:[#allocation2 + $0x60] sm:$0xe] }
 0x116   : > { %v1854_v18 = vrot.slane %v1852_v22, 5  ;;  %v2338_v3 = vunpack.c.l.b16 %v2118_v63  ;;  %v1447_v54 = vsel %vm1441_vm2, %v1438_v40, %v1349_v60  ;;  %3101 = vmatpush.bf16.msra.mxu2 %v3079_v46  ;;  %v1863_v4 = vshrl.u32 %v2924_v53, 16 }
 0x117   : > { %v4148_v37 = vpop.permute.xlu0 %2299  ;;  %v1866_v7 = vshll.u32 %v2924_v53, 16  ;;  %1531 = vmatpush.bf16.msra.mxu0 %v3079_v46  ;;  %v2362_v11 = vpack.c.b16 %v2358_v29, %v2357_v30  ;;  %v1860_v44 = vrot.slane %v1858_v33, 5  ;;  %v1872_v52 = vshll.u32 %v4146_v62, 16 }
 0x118   : > { %v1855_v24 = vor.u32 %v1854_v18, %v1851_v45  ;;  %v2342_v58 = vpack.c.b16 %v2338_v3, %v2337_v56  ;;  %v1865_v13 = vrot.slane %v1863_v4, 4  ;;  %v2473_v16 = vunpack.c.l.b16 %v2455_v2  ;;  %v2939_v3 = vld [vmem:[#allocation2 + $0x68] sm:$0xe] }
 0x119   : > { %v1369_v12 = vpop.permute.xlu1 %1368  ;;  %v1868_v14 = vrot.slane %v1866_v7, 5  ;;  %2369 = vrot.lane.b32.xlu0 %v2362_v11, %s3398_s23  ;;  %v1874_v26 = vrot.slane %v1872_v52, 5  ;;  %vm1450_vm3 = vcmask 457728   ;;  %vm1459_vm4 = vcmask 523264   ;;  %v3096_v11 = vld [vmem:[%s3542_s30 + $0x10] sm:$0xff] }
 0x11a   : > { %v1856_v23 = vrot.slane %v1855_v24, 4  ;;  %2349 = vrot.lane.b32.xlu2 %v2342_v58, %s3397_s11  ;;  %v2478_v6 = vpack.c.b16 %v2473_v16, %v2473_v16  ;;  %3102 = vmatpush.bf16.msra.mxu2 %v3078_v48  ;;  %v1456_v5 = vsel %vm1450_vm3, %v1447_v54, %v1369_v12  ;;  %vm1512_vm5 = vcmask 588800   ;;  %v2940_v24 = vld [vmem:[#allocation2 + $0x70] sm:$0xe]  ;;  %v2859_v58 = vld [vmem:[#allocation2 + $0x20] sm:$0xf] }
 0x11b   : > { %v1869_v28 = vor.u32 %v1868_v14, %v1865_v13  ;;  %v869_v60 = vshrl.u32 %v2759_v17, 16  ;;  %v872_v19 = vshll.u32 %v2759_v17, 16  ;;  %v878_v10 = vshll.u32 %v4156_v21, 16  ;;  %1532 = vmatpush.bf16.msra.mxu0 %v3078_v48  ;;  %v3075_v13 = vld [vmem:[#allocation2 + $0x24] sm:$0xf0] }
 0x11c   : > { %v1861_v34 = vsel %vm3772_vm11, %v1856_v23, %v1860_v44  ;;  %v2492_v42 = vsel %vm1521_vm14, %v2478_v6, 0  ;;  %v883_v22 = vshrl.u32 %v2760_v36, 16  ;;  %v886_v9 = vshll.u32 %v2760_v36, 16  ;;  %v2956_v6 = vld [vmem:[#allocation2 + $0x78] sm:$0xf] }
 0x11d   : > { %v1389_v55 = vpop.permute.xlu2 %1388  ;;  %v1870_v38 = vrot.slane %v1869_v28, 4  ;;  %v2265_v41 = vunpack.c.l.b16 %v1861_v34  ;;  %3103 = vmatpush.bf16.msra.mxu3 %v2492_v42  ;;  %v871_v0 = vrot.slane %v869_v60, 4  ;;  %v874_v47 = vrot.slane %v872_v19, 5  ;;  %2497 = vmatpush.bf16.msra.mxu1 %v2492_v42  ;;  %v3095_v60 = vld [vmem:[%s3542_s30 + $0x8] sm:$0xff] }
 0x11e   : > { %v1465_v40 = vsel %vm1459_vm4, %v1456_v5, %v1389_v55  ;;  %v880_v15 = vrot.slane %v878_v10, 5  ;;  %v892_v53 = vshll.u32 %v4161_v32, 16  ;;  %v2915_v33 = vrot.slane %v2907_v35, 9  ;;  %v4195_v5 = vld [vmem:[#allocation2 + $0x74] sm:$0x1] }
 0x11f   : > { %v4169_v46 = vpop.permute.xlu0 %1228  ;;  %2887 = vmatmul.msk.bf16.vlgmr.msra.gmra.mxu2 %vm1512_vm5, %v1465_v40  ;;  %v1875_v51 = vsel %vm3772_vm11, %v1870_v38, %v1874_v26  ;;  %v875_v57 = vor.u32 %v874_v47, %v871_v0  ;;  %v885_v30 = vrot.slane %v883_v22, 4  ;;  %v1779_v63 = vrot.slane %v4035_v31, 5  ;;  %v3007_v10 = vld [vmem:[#allocation2 + $0x68] sm:$0xf]  ;;  %v3087_v35 = vld [vmem:[#allocation2 + $0x6c] sm:$0xf0] }
 0x120   : > { %v2266_v56 = vunpack.c.l.b16 %v1875_v51  ;;  %v888_v45 = vrot.slane %v886_v9, 5  ;;  %v2916_v18 = vrot.slane %v2908_v50, 9  ;;  %v1783_v2 = vrot.slane %v4039_v25, 5  ;;  %v2955_v25 = vld [vmem:[#allocation2 + $0x70] sm:$0xf] }
 0x121   : > { %v4176_v29 = vpop.permute.xlu1 %1248  ;;  %v2396_v54 = vsel %vm1414_vm15, %v4142_v20, %v4055_v8  ;;  %3104 = vmatpush.bf16.msra.mxu3 %v3097_v43  ;;  %v876_v7 = vrot.slane %v875_v57, 4  ;;  %v1780_v48 = vsel %vm3761_vm8, %v2915_v33, %v1779_v63  ;;  %v894_v44 = vrot.slane %v892_v53, 5  ;;  %2498 = vmatpush.bf16.msra.mxu1 %v3097_v43  ;;  %v4205_v40 = vld [vmem:[#allocation2 + $0x7c] sm:$0x1]  ;;  %v2791_v51 = vld [vmem:[#allocation2 + $0x20] sm:$0xf] }
 0x122   : > { %v2272_v4 = vpack.c.b16 %v2266_v56, %v2265_v41  ;;  %v889_v31 = vor.u32 %v888_v45, %v885_v30  ;;  %v1784_v52 = vsel %vm3761_vm8, %v2916_v18, %v1783_v2  ;;  %v2217_v12 = vunpack.c.l.b16 %v1780_v48  ;;  %v3094_v57 = vld [vmem:[%s3542_s30] sm:$0xff]  ;;  %s2594_s30 = sshll.u32 %s3551_s4, 4  ;;  %s2595_s30 = int_to_ptr.vmem [resolvable:$true] %s2594_s30 }
 0x123   : > { %v881_v8 = vsel %vm3772_vm11, %v876_v7, %v880_v15  ;;  %v2218_v20 = vunpack.c.l.b16 %v1784_v52  ;;  %v2947_v14 = vrot.slane %v2939_v3, 9  ;;  %v1966_v16 = vrot.slane %v4127_v39, 5  ;;  %v4213_v63 = vld [vmem:[#allocation2 + $0x24] sm:$0x1] }
 0x124   : > { %2277 = vrot.lane.b32.xlu1 %v2272_v4, %s3394_s7  ;;  %v2404_v17 = vsel %vm1423_vm0, %v2396_v54, %v4105_v49  ;;  %v890_v23 = vrot.slane %v889_v31, 4  ;;  %v2948_v28 = vrot.slane %v2940_v24, 9  ;;  %v1286_v34 = vunpack.c.l.b16 %v881_v8  ;;  %v2792_v54 = vld [vmem:[#allocation2 + $0x28] sm:$0xf] }
 0x125   : > { %v4193_v26 = vpop.permute.xlu2 %1276  ;;  %v2224_v55 = vpack.c.b16 %v2218_v20, %v2217_v12  ;;  %3105 = vmatpush.bf16.msra.mxu3 %v3096_v11  ;;  %v1967_v19 = vsel %vm3761_vm8, %v2947_v14, %v1966_v16  ;;  %v1970_v39 = vrot.slane %v4146_v62, 5  ;;  %v2412_v49 = vsel %vm1432_vm1, %v2404_v17, %v4148_v37  ;;  %2499 = vmatpush.bf16.msra.mxu1 %v3096_v11 }
 0x126   : > { %v895_v38 = vsel %vm3772_vm11, %v890_v23, %v894_v44  ;;  %v2860_v41 = vor.u32 %v3075_v13, %v2859_v58  ;;  %v2285_v42 = vunpack.c.l.b16 %v1967_v19  ;;  %v2036_v0 = vshrl.u32 %v2955_v25, 16  ;;  %v4220_v44 = vld [vmem:[#allocation2 + $0x2c] sm:$0x1] }
 0x127   : > { %v2348_v36 = vpop.permute.xlu0 %2347  ;;  %v1287_v43 = vunpack.c.l.b16 %v895_v38  ;;  %2229 = vrot.lane.b32.xlu2 %v2224_v55, %s3391_s10  ;;  %v1971_v62 = vsel %vm3761_vm8, %v2948_v28, %v1970_v39  ;;  %v2039_v47 = vshll.u32 %v2955_v25, 16  ;;  %v3008_v15 = vor.u32 %v3087_v35, %v3007_v10  ;;  %v2971_v55 = vld [vmem:[#allocation2 + $0x70] sm:$0xe]  ;;  %v2775_v35 = vld [vmem:[#allocation2 + $0x18] sm:$0xe] }
 0x128   : > { %v2045_v37 = vshll.u32 %v4195_v5, 16  ;;  %v2050_v22 = vshrl.u32 %v2956_v6, 16  ;;  %v2053_v50 = vshll.u32 %v2956_v6, 16  ;;  %v2038_v53 = vrot.slane %v2036_v0, 4  ;;  %v2972_v38 = vld [vmem:[#allocation2 + $0x78] sm:$0xe] }
 0x129   : > { %v1293_v9 = vpack.c.b16 %v1287_v43, %v1286_v34  ;;  %3106 = vmatpush.bf16.msra.mxu3 %v3095_v60  ;;  %v2041_v33 = vrot.slane %v2039_v47, 5  ;;  %v2059_v56 = vshll.u32 %v4205_v40, 16  ;;  %v2368_v30 = vpop.permute.xlu1 %2367  ;;  %v2286_v45 = vunpack.c.l.b16 %v1971_v62  ;;  %2500 = vmatpush.bf16.msra.mxu1 %v3095_v60 }
 0x12a   : > { %v2047_v18 = vrot.slane %v2045_v37, 5  ;;  %v2052_v2 = vrot.slane %v2050_v22, 4  ;;  %v2055_v3 = vrot.slane %v2053_v50, 5  ;;  %v2420_v48 = vsel %vm1441_vm2, %v2412_v49, %v4110_v59  ;;  %v2776_v37 = vld [vmem:[#allocation2 + $0x20] sm:$0xe] }
 0x12b   : > { %1298 = vrot.lane.b32.xlu0 %v1293_v9, %s3394_s7  ;;  %v2042_v4 = vor.u32 %v2041_v33, %v2038_v53  ;;  %v2061_v7 = vrot.slane %v2059_v56, 5  ;;  %v1057_v11 = vshrl.u32 %v2791_v51, 16  ;;  %v2428_v31 = vsel %vm1450_vm3, %v2420_v48, %v2348_v36 }
 0x12c   : > { %1346 = vrot.lane.b32.xlu1 %v2860_v41, %s3395_s8  ;;  %v2056_v24 = vor.u32 %v2055_v3, %v2052_v2  ;;  %v1060_v52 = vshll.u32 %v2791_v51, 16  ;;  %v1066_v12 = vshll.u32 %v4213_v63, 16  ;;  %v2436_v20 = vsel %vm1459_vm4, %v2428_v31, %v2368_v30  ;;  %v3082_v30 = vld [vmem:[#allocation2 + $0x54] sm:$0xf0]  ;;  %v3066_v2 = vld [vmem:[#allocation2 + $0x4] sm:$0xf0] }
 0x12d   : > { %v2043_v8 = vrot.slane %v2042_v4, 4  ;;  %3107 = vmatpush.bf16.msra.mxu3 %v3094_v57  ;;  %v1059_v58 = vrot.slane %v1057_v11, 4  ;;  %v1071_v13 = vshrl.u32 %v2792_v54, 16  ;;  %v2292_v14 = vpack.c.b16 %v2286_v45, %v2285_v42  ;;  %v4226_v59 = vpop.permute.xlu2 %2275  ;;  %2501 = vmatpush.bf16.msra.mxu1 %v3094_v57  ;;  %v2987_v57 = vld [vmem:[#allocation2 + $0x50] sm:$0xf] }
 0x12e   : > { %v2057_v16 = vrot.slane %v2056_v24, 4  ;;  %v1062_v17 = vrot.slane %v1060_v52, 5  ;;  %v1074_v23 = vshll.u32 %v2792_v54, 16  ;;  %v1068_v6 = vrot.slane %v1066_v12, 5 }
 0x12f   : > { %v4223_v25 = vpop.permute.xlu0 %2227  ;;  %2257 = vrot.lane.b32.xlu2 %v3008_v15, %s3393_s5  ;;  %v2048_v28 = vsel %vm3772_vm11, %v2043_v8, %v2047_v18  ;;  %v1073_v36 = vrot.slane %v1071_v13, 4  ;;  %v1080_v34 = vshll.u32 %v4220_v44, 16  ;;  %v2979_v62 = vrot.slane %v2971_v55, 9  ;;  %v2823_v18 = vld [vmem:[#allocation2] sm:$0xf] }
 0x130   : > { %v2062_v60 = vsel %vm3772_vm11, %v2057_v16, %v2061_v7  ;;  %v2333_v19 = vunpack.c.l.b16 %v2048_v28  ;;  %3051 = vmatmul.msk.bf16.vlgmr.msra.gmra.mxu3 %vm1512_vm5, %v2436_v20  ;;  %v1063_v39 = vor.u32 %v1062_v17, %v1059_v58  ;;  %v1076_v10 = vrot.slane %v1074_v23, 5  ;;  %v2807_v13 = vld [vmem:[#allocation2 + $0x20] sm:$0xe] }
 0x131   : > { %v2334_v49 = vunpack.c.l.b16 %v2062_v60  ;;  %v1082_v43 = vrot.slane %v1080_v34, 5  ;;  %v2153_v15 = vrot.slane %v4195_v5, 5  ;;  %v2783_v22 = vrot.slane %v2775_v35, 9 }
 0x132   : > { %v1064_v41 = vrot.slane %v1063_v39, 4  ;;  %v1077_v42 = vor.u32 %v1076_v10, %v1073_v36  ;;  %v986_v50 = vrot.slane %v4156_v21, 5  ;;  %v2980_v53 = vrot.slane %v2972_v38, 9  ;;  %v3091_v36 = vld [vmem:[#allocation2 + $0x74] sm:$0xf0] }
 0x133   : > { %2297 = vrot.lane.b32.xlu0 %v2292_v14, %s3396_s9  ;;  %v2340_v0 = vpack.c.b16 %v2334_v49, %v2333_v19  ;;  %v2157_v33 = vrot.slane %v4205_v40, 5  ;;  %v2784_v3 = vrot.slane %v2776_v37, 9  ;;  %v990_v54 = vrot.slane %v4161_v32, 5  ;;  %v2808_v14 = vld [vmem:[#allocation2 + $0x28] sm:$0xe] }
 0x134   : > { %v1297_v47 = vpop.permute.xlu1 %1296  ;;  %v1069_v51 = vsel %vm3772_vm11, %v1064_v41, %v1068_v6  ;;  %v1078_v9 = vrot.slane %v1077_v42, 4  ;;  %v987_v5 = vsel %vm3761_vm8, %v2783_v22, %v986_v50  ;;  %v2988_v40 = vor.u32 %v3082_v30, %v2987_v57  ;;  %v3023_v6 = vld [vmem:[#allocation2 + $0x70] sm:$0xf] }
 0x135   : > { %2345 = vrot.lane.b32.xlu1 %v2340_v0, %s3397_s11  ;;  %v1354_v45 = vunpack.c.l.b16 %v1069_v51  ;;  %v1306_v7 = vunpack.c.l.b16 %v987_v5  ;;  %v1345_v48 = vpop.permute.xlu2 %1344  ;;  %v2154_v11 = vsel %vm3761_vm8, %v2979_v62, %v2153_v15  ;;  %v2158_v24 = vsel %vm3761_vm8, %v2980_v53, %v2157_v33 }
 0x136   : > { %v1083_v21 = vsel %vm3772_vm11, %v1078_v9, %v1082_v43  ;;  %v991_v31 = vsel %vm3761_vm8, %v2784_v3, %v990_v54  ;;  %v2824_v52 = vor.u32 %v3066_v2, %v2823_v18  ;;  %v2353_v8 = vunpack.c.l.b16 %v2154_v11  ;;  %v2835_v2 = vld [vmem:[#allocation2 + $0x30] sm:$0xf] }
 0x137   : > { %v2256_v56 = vpop.permute.xlu0 %2255  ;;  %v1355_v4 = vunpack.c.l.b16 %v1083_v21  ;;  %v1307_v27 = vunpack.c.l.b16 %v991_v31  ;;  %v2354_v32 = vunpack.c.l.b16 %v2158_v24  ;;  %v2373_v16 = vsel %vm1392_vm12, %v2988_v40, %v4135_v1  ;;  %v3069_v21 = vld [vmem:[#allocation2 + $0x34] sm:$0xf0]  ;;  %v2999_v31 = vld [vmem:[#allocation2 + $0x80] sm:$0xf] }
 0x138   : > { %v1395_v23 = vsel %vm1392_vm12, %v2824_v52, %v4169_v46  ;;  %v2384_v28 = vsel %vm1405_vm13, %v2373_v16, %v4223_v25  ;;  %v2815_v34 = vrot.slane %v2807_v13, 9  ;;  %v1174_v55 = vrot.slane %v4213_v63, 5  ;;  %v3085_v52 = vld [vmem:[#allocation2 + $0x84] sm:$0xf0] }
 0x139   : > { %v1361_v12 = vpack.c.b16 %v1355_v4, %v1354_v45  ;;  %v1313_v20 = vpack.c.b16 %v1307_v27, %v1306_v7  ;;  %v2816_v60 = vrot.slane %v2808_v14, 9  ;;  %v1178_v19 = vrot.slane %v4220_v44, 5 }
 0x13a   : > { %v2360_v39 = vpack.c.b16 %v2354_v32, %v2353_v8  ;;  %v2392_v1 = vsel %vm1414_vm15, %v2384_v28, %v2256_v56  ;;  %v1407_v10 = vsel %vm1405_vm13, %v1395_v23, %v4176_v29  ;;  %v3024_v46 = vor.u32 %v3091_v36, %v3023_v6 }
 0x13b   : > { %1366 = vrot.lane.b32.xlu0 %v1361_v12, %s3397_s11  ;;  %1318 = vrot.lane.b32.xlu2 %v1313_v20, %s3396_s9  ;;  %v2400_v25 = vsel %vm1423_vm0, %v2392_v1, %v4226_v59  ;;  %v1175_v49 = vsel %vm3761_vm8, %v2815_v34, %v1174_v55  ;;  %v1179_v63 = vsel %vm3761_vm8, %v2816_v60, %v1178_v19 }
 0x13c   : > { %v2296_v58 = vpop.permute.xlu1 %2295  ;;  %v1416_v38 = vsel %vm1414_vm15, %v1407_v10, %v4193_v26  ;;  %v1374_v59 = vunpack.c.l.b16 %v1175_v49  ;;  %v1375_v43 = vunpack.c.l.b16 %v1179_v63  ;;  %v2836_v3 = vor.u32 %v3069_v21, %v2835_v2  ;;  %v2827_v49 = vld [vmem:[#allocation2 + $0x10] sm:$0xf]  ;;  %v3067_v63 = vld [vmem:[#allocation2 + $0x14] sm:$0xf0] }
 0x13d   : > { %v2344_v35 = vpop.permute.xlu2 %2343  ;;  %v1425_v29 = vsel %vm1423_vm0, %v1416_v38, %v1297_v47  ;;  %v2408_v42 = vsel %vm1432_vm1, %v2400_v25, %v2296_v58  ;;  %v3000_v8 = vor.u32 %v3085_v52, %v2999_v31  ;;  %v4308_v38 = vld [vmem:[%s243_s27] ss:$0 sm:$0xff] }
 0x13e   : > { %v1381_v15 = vpack.c.b16 %v1375_v43, %v1374_v59  ;;  %v3083_v59 = vld [vmem:[#allocation2 + $0x64] sm:$0xf0] }
 0x13f   : > { %v1317_v17 = vpop.permute.xlu0 %1316 }
 0x140   : > { %v1434_v62 = vsel %vm1432_vm1, %v1425_v29, %v1317_v17 }
 0x141   : > { %v1443_v0 = vsel %vm1441_vm2, %v1434_v62, %v1345_v48 }
 0x143   : > { %2365 = vrot.lane.b32.xlu0 %v2360_v39, %s3398_s23  ;;  %2325 = vrot.lane.b32.xlu2 %v3024_v46, %s3395_s8  ;;  %s3316_s8 = scalar_lea.hbm %s4406_s3, 384 }
 0x144   : > { %v1365_v44 = vpop.permute.xlu1 %1364 }
 0x145   : > { %v1452_v26 = vsel %vm1450_vm3, %v1443_v0, %v1365_v44  ;;  %v1235_v50 = vpop.permute.xlu2 %1234 }
 0x146   : > { %v1404_v7 = vsel %vm1392_vm12, %v2836_v3, %v1235_v50 }
 0x147   : > { %v2324_v41 = vpop.permute.xlu0 %2323 }
 0x148   : > { %v2416_v61 = vsel %vm1441_vm2, %v2408_v42, %v2324_v41  ;;  %v2828_v41 = vor.u32 %v3067_v63, %v2827_v49  ;;  %v2991_v42 = vld [vmem:[#allocation2 + $0x60] sm:$0xf] }
 0x149   : > { %v2424_v37 = vsel %vm1450_vm3, %v2416_v61, %v2344_v35 }
 0x14b   : > { %1386 = vrot.lane.b32.xlu2 %v1381_v15, %s3398_s23  ;;  %v2992_v15 = vor.u32 %v3083_v59, %v2991_v42 }
 0x14c   : > { %v2364_v22 = vpop.permute.xlu1 %2363 }
 0x14d   : > { %v2432_v47 = vsel %vm1459_vm4, %v2424_v37, %v2364_v22  ;;  %v2234_v56 = vpop.permute.xlu2 %2233 }
 0x14e   : > { %3049 = vmatmul.msk.bf16.vlgmr.msra.gmra.mxu1 %vm1512_vm5, %v2432_v47 }
 0x14f   : > { %v1385_v51 = vpop.permute.xlu0 %1384 }
 0x150   : > { %v1461_v9 = vsel %vm1459_vm4, %v1452_v26, %v1385_v51 }
 0x151   : > { %2885 = vmatmul.msk.bf16.vlgmr.msra.gmra.mxu0 %vm1512_vm5, %v1461_v9 }
 0x154   : > { %v1255_v53 = vpop.permute.xlu1 %1254 }
 0x155   : > { %v1303_v45 = vpop.permute.xlu2 %1302  ;;  %v1413_v48 = vsel %vm1405_vm13, %v1404_v7, %v1255_v53  ;;  %v4330_v7 = vld [vmem:[%s243_s27] ss:$0 sm:$0xff]  ;;  %s3310_s27 = sshra.s32 %s2597_s6, 4  ;;  %s3311_s27 = int_to_ptr.hbm [resolvable:$true] %s3310_s27 }
 0x156   : > { %s3312_s10 = scalar_lea.hbm %s3311_s27, 128  ;;  %p3317_p9 = scmp.lt.s32.totalorder %s3311_s27, %s4406_s3 }
 0x157   : > { %v2214_v33 = vpop.permute.xlu0 %2213  ;;  %p3313_p6 = scmp.ne.s32.totalorder %s3311_s27, %s3312_s10  ;;  %p3318_p10 = scmp.lt.s32.totalorder %s3316_s8, %s3312_s10 }
 0x158   : > { %v2382_v14 = vsel %vm1392_vm12, %v3000_v8, %v2214_v33 }
 0x159   : > { %v2390_v23 = vsel %vm1405_vm13, %v2382_v14, %v2234_v56  ;;  %p3314_p7 = pnand %p3313_p6, %p3502_p13  ;;  %p3319_p11 = por %p3318_p10, %p3317_p9 }
 0x15b   : > { %p3315_p8 = pneg %p3314_p7 }
 0x15c   : > { %v2262_v57 = vpop.permute.xlu1 %2261 }
 0x15d   : > { %v2302_v54 = vpop.permute.xlu2 %2301  ;;  %v2398_v6 = vsel %vm1414_vm15, %v2390_v23, %v2262_v57  ;;  %p3320_p12 = pnand %p3319_p11, %p3315_p8 }
 0x15f   : > { %v1283_v30 = vpop.permute.xlu0 %1282 }
 0x160   : > { %v1422_v11 = vsel %vm1414_vm15, %v1413_v48, %v1283_v30 }
 0x161   : > { %v1431_v27 = vsel %vm1423_vm0, %v1422_v11, %v1303_v45 }
 0x164   : > { %v1323_v5 = vpop.permute.xlu1 %1322 }
 0x165   : > { %v1440_v32 = vsel %vm1432_vm1, %v1431_v27, %v1323_v5 }
 0x167   : > { %v2282_v18 = vpop.permute.xlu0 %2281 }
 0x168   : > { %v2406_v36 = vsel %vm1423_vm0, %v2398_v6, %v2282_v18 }
 0x169   : > { %v2414_v55 = vsel %vm1432_vm1, %v2406_v36, %v2302_v54 }
 0x16a   : > { %v1231_v12 = vpop.permute.xlu2 %1230 }
 0x16b   : > { %v1398_v61 = vsel %vm1392_vm12, %v2828_v41, %v1231_v12 }
 0x16c   : > { %v2330_v4 = vpop.permute.xlu1 %2329 }
 0x16d   : > { %v2422_v19 = vsel %vm1441_vm2, %v2414_v55, %v2330_v4 }
 0x16f   : > { %v1351_v40 = vpop.permute.xlu0 %1350 }
 0x170   : > { %v1449_v20 = vsel %vm1441_vm2, %v1440_v32, %v1351_v40 }
 0x174   : > { %v2210_v24 = vpop.permute.xlu1 %2209  ;;  %v2350_v28 = vpop.permute.xlu2 %2349 }
 0x175   : > { %v2430_v39 = vsel %vm1450_vm3, %v2422_v19, %v2350_v28  ;;  %v2376_v47 = vsel %vm1392_vm12, %v2992_v15, %v2210_v24 }
 0x17a   : > { %v1371_v58 = vpop.permute.xlu0 %1370 }
 0x17b   : > { %v1458_v13 = vsel %vm1450_vm3, %v1449_v20, %v1371_v58 }
 0x17c   : > { %v1391_v16 = vpop.permute.xlu1 %1390 }
 0x17d   : > { %v1467_v17 = vsel %vm1459_vm4, %v1458_v13, %v1391_v16 }
 0x17e   : > { %2888 = vmatmul.msk.bf16.gmra.mxu2 %vm1512_vm5, %v1467_v17 }
 0x181   : > { %v2230_v60 = vpop.permute.xlu2 %2229 }
 0x182   : > { %v2386_v56 = vsel %vm1405_vm13, %v2376_v47, %v2230_v60 }
 0x183   : > { %v1251_v34 = vpop.permute.xlu0 %1250 }
 0x184   : > { %v1279_v25 = vpop.permute.xlu1 %1278  ;;  %v1409_v37 = vsel %vm1405_vm13, %v1398_v61, %v1251_v34 }
 0x185   : > { %v1418_v50 = vsel %vm1414_vm15, %v1409_v37, %v1279_v25 }
 0x189   : > { %v2258_v46 = vpop.permute.xlu2 %2257 }
 0x18a   : > { %v2394_v5 = vsel %vm1414_vm15, %v2386_v56, %v2258_v46 }
 0x18b   : > { %v2370_v1 = vpop.permute.xlu0 %2369 }
 0x18c   : > { %v2438_v10 = vsel %vm1459_vm4, %v2430_v39, %v2370_v1 }
 0x18d   : > { %3052 = vmatmul.msk.bf16.gmra.mxu3 %vm1512_vm5, %v2438_v10 }
 0x195   : > { %v1319_v35 = vpop.permute.xlu2 %1318 }
 0x196   : > { %v2278_v29 = vpop.permute.xlu1 %2277 }
 0x197   : > { %v2402_v21 = vsel %vm1423_vm0, %v2394_v5, %v2278_v29 }
 0x19d   : > { %v1299_v44 = vpop.permute.xlu0 %1298  ;;  %v2326_v0 = vpop.permute.xlu2 %2325 }
 0x19e   : > { %v1427_v51 = vsel %vm1423_vm0, %v1418_v50, %v1299_v44  ;;  %v1347_v9 = vpop.permute.xlu1 %1346 }
 0x19f   : > { %v1436_v57 = vsel %vm1432_vm1, %v1427_v51, %v1319_v35 }
 0x1a0   : > { %v1445_v18 = vsel %vm1441_vm2, %v1436_v57, %v1347_v9 }
 0x1a2   : > { %v1544_v43 = vpop.f32.mrf.mxu2 }
 0x1a3   : > { %v1586_v62 = vadd.f32 %v4308_v38, %v1544_v43 }
 0x1a5   : > { %v1594_v22 = vmax.f32 %v1586_v62, 0.0  ;;  %v2298_v26 = vpop.permute.xlu0 %2297  ;;  %v1387_v45 = vpop.permute.xlu2 %1386 }
 0x1a6   : > { %v2410_v54 = vsel %vm1432_vm1, %v2402_v21, %v2298_v26 }
 0x1a7   : > { %1602 = vst [vmem:[%s3551_s4 + $0x20] sm:$0xff] %v1594_v22  ;;  %v2418_v40 = vsel %vm1441_vm2, %v2410_v54, %v2326_v0  ;;  %v2346_v48 = vpop.permute.xlu1 %2345 }
 0x1a8   : > { %v2426_v31 = vsel %vm1450_vm3, %v2418_v40, %v2346_v48 }
 0x1aa   : > { %v1546_v53 = vpop.f32.mrf.mxu2 }
 0x1ab   : > { %v1587_v33 = vadd.f32 %v4308_v38, %v1546_v53 }
 0x1ad   : > { %v1595_v30 = vmax.f32 %v1587_v33, 0.0  ;;  %v1367_v2 = vpop.permute.xlu0 %1366 }
 0x1ae   : > { %v1454_v3 = vsel %vm1450_vm3, %v1445_v18, %v1367_v2 }
 0x1af   : > { %1603 = vst [vmem:[%s3551_s4 + $0x28] sm:$0xff] %v1595_v30  ;;  %v1463_v4 = vsel %vm1459_vm4, %v1454_v3, %v1387_v45 }
 0x1b0   : > { %2886 = vmatmul.msk.bf16.gmra.mxu0 %vm1512_vm5, %v1463_v4 }
 0x1b3   : > { %v2513_v11 = vpop.f32.mrf.mxu3 }
 0x1b4   : > { %v2555_v24 = vadd.f32 %v4330_v7, %v2513_v11 }
 0x1b5   : > { %v2366_v52 = vpop.permute.xlu0 %2365 }
 0x1b6   : > { %v2434_v12 = vsel %vm1459_vm4, %v2426_v31, %v2366_v52  ;;  %v2563_v27 = vmax.f32 %v2555_v24, 0.0 }
 0x1b7   : > { %3050 = vmatmul.msk.bf16.gmra.mxu1 %vm1512_vm5, %v2434_v12 }
 0x1b8   : > { %3057 = vst [vmem:[%s3551_s4 + $0x60] sm:$0xff] %v2563_v27 }
 0x1bb   : > { %v2515_v8 = vpop.f32.mrf.mxu3 }
 0x1bc   : > { %v2556_v32 = vadd.f32 %v4330_v7, %v2515_v8 }
 0x1be   : > { %v2564_v20 = vmax.f32 %v2556_v32, 0.0 }
 0x1c0   : > { %3058 = vst [vmem:[%s3551_s4 + $0x68] sm:$0xff] %v2564_v20 }
 0x1cb   : > { %v2503_v58 = vpop.f32.mrf.mxu1 }
 0x1cc   : > { %v2551_v13 = vadd.f32 %v4330_v7, %v2503_v58 }
 0x1ce   : > { %v1534_v14 = vpop.f32.mrf.mxu0  ;;  %v2559_v17 = vmax.f32 %v2551_v13, 0.0 }
 0x1cf   : > { %v1582_v16 = vadd.f32 %v4308_v38, %v1534_v14 }
 0x1d0   : > { %3053 = vst [vmem:[%s3551_s4 + $0x40] sm:$0xff] %v2559_v17 }
 0x1d1   : > { %v1590_v23 = vmax.f32 %v1582_v16, 0.0 }
 0x1d3   : > { %1598 = vst [vmem:[%s3551_s4] sm:$0xff] %v1590_v23  ;;  %v2505_v28 = vpop.f32.mrf.mxu1 }
 0x1d4   : > { %v2552_v6 = vadd.f32 %v4330_v7, %v2505_v28 }
 0x1d6   : > { %v1536_v36 = vpop.f32.mrf.mxu0  ;;  %v2560_v55 = vmax.f32 %v2552_v6, 0.0 }
 0x1d7   : > { %v1583_v34 = vadd.f32 %v4308_v38, %v1536_v36 }
 0x1d8   : > { %3054 = vst [vmem:[%s3551_s4 + $0x48] sm:$0xff] %v2560_v55 }
 0x1d9   : > { %v1591_v60 = vmax.f32 %v1583_v34, 0.0 }
 0x1db   : > { %1599 = vst [vmem:[%s3551_s4 + $0x8] sm:$0xff] %v1591_v60 }
 0x201   : > { %v1549_v19 = vpop.f32.mrf.mxu2 }
 0x202   : > { %v1588_v39 = vadd.f32 %v4308_v38, %v1549_v19 }
 0x204   : > { %v1596_v1 = vmax.f32 %v1588_v39, 0.0 }
 0x206   : > { %1604 = vst [vmem:[%s3551_s4 + $0x30] sm:$0xff] %v1596_v1 }
 0x209   : > { %v1551_v10 = vpop.f32.mrf.mxu2 }
 0x20a   : > { %v1589_v46 = vadd.f32 %v4308_v38, %v1551_v10 }
 0x20c   : > { %v1597_v25 = vmax.f32 %v1589_v46, 0.0 }
 0x20e   : > { %1605 = vst [vmem:[%s3551_s4 + $0x38] sm:$0xff] %v1597_v25 }
 0x210   : > { %v2518_v35 = vpop.f32.mrf.mxu3 }
 0x211   : > { %v2557_v49 = vadd.f32 %v4330_v7, %v2518_v35 }
 0x213   : > { %v2565_v63 = vmax.f32 %v2557_v49, 0.0 }
 0x215   : > { %3059 = vst [vmem:[%s3551_s4 + $0x70] sm:$0xff] %v2565_v63 }
 0x218   : > { %v2520_v44 = vpop.f32.mrf.mxu3 }
 0x219   : > { %v2558_v41 = vadd.f32 %v4330_v7, %v2520_v44 }
 0x21b   : > { %v2566_v29 = vmax.f32 %v2558_v41, 0.0 }
 0x21d   : > { %3060 = vst [vmem:[%s3551_s4 + $0x78] sm:$0xff] %v2566_v29 }
 0x22d   : > { %v1539_v42 = vpop.f32.mrf.mxu0 }
 0x22e   : > { %v1584_v59 = vadd.f32 %v4308_v38, %v1539_v42 }
 0x230   : > { %v1592_v43 = vmax.f32 %v1584_v59, 0.0 }
 0x232   : > { %1600 = vst [vmem:[%s3551_s4 + $0x10] sm:$0xff] %v1592_v43 }
 0x234   : > { %v2508_v62 = vpop.f32.mrf.mxu1 }
 0x235   : > { %v2553_v61 = vadd.f32 %v4330_v7, %v2508_v62  ;;  %v1541_v0 = vpop.f32.mrf.mxu0 }
 0x236   : > { %v1585_v15 = vadd.f32 %v4308_v38, %v1541_v0 }
 0x237   : > { %v2561_v37 = vmax.f32 %v2553_v61, 0.0 }
 0x238   : > { %v1593_v22 = vmax.f32 %v1585_v15, 0.0 }
 0x239   : > { %3055 = vst [vmem:[%s3551_s4 + $0x50] sm:$0xff] %v2561_v37 }
 0x23a   : > { %1601 = vst [vmem:[%s3551_s4 + $0x18] sm:$0xff] %v1593_v22 }
 0x23c   : > { %v2510_v26 = vpop.f32.mrf.mxu1 }
 0x23d   : > { %v2554_v50 = vadd.f32 %v4330_v7, %v2510_v26 }
 0x23f   : > { %v2562_v47 = vmax.f32 %v2554_v50, 0.0 }
 0x241   : > { %3056 = vst [vmem:[%s3551_s4 + $0x58] sm:$0xff] %v2562_v47 }
 0x242   : > { %3323 = shalt.err (!%p3320_p12)
}
 0x243   : > { %s3399_s28 = smov 128   ;;  %s3400_s4 = smov 384  }
 0x244   : > { %3118 = dma.vmem_to_hbm [thread:$0]  (%p3502_p13), %s2595_s30, 2048, %s2597_s6, %s2577_s15, %s3399_s28, %s3400_s4, %s3392_s19  }
 0x245 PF: > { %p3138_p2 = scmp.ge.s32.totalorder %s3382_s17, 2  ;;  %s2611_s23 = sand.u32 1, %s3362_s12  }
 0x246   : > { %s2612_s25 = scalar_lea.sflag [#allocation6], %s2611_s23 }
 0x247   : > { %p3132_p3 = pnand %p3138_p2, %p3506_p0 }
 0x249   : > { %p3133_p1 = pneg %p3132_p3 }
 0x24b   : > { %3357 = dma.done.wait (%p3133_p1), %s2612_s25, 2048  }
 0x24c   : > { %3359 = vsyncadd (%p3133_p1), %s2612_s25, 4294965248  ;;  %s20_s17 = sadd.s32 1, %s3382_s17   ;;  %s4420_s12 = smov %s3366_s13 }
 0x24d   : > { %p17_p4 = scmp.ge.s32.totalorder %s20_s17, 5   ;;  %s4421_s13 = smov %s3370_s14 }
 0x24e   : > { %s4422_s14 = smov %s3468_s24  ;;  %s4423_s15 = smov %s3378_s16 }
 0x24f   : > { %s4424_s16 = smov %s4426_s18  ;;  %19 = sbr.rel (!%p17_p4) target bundleno = 7 (0x7), region = 106 }
 0x254   :  { %2618 = vsyncpa [#allocation5], 1 }
 0x255   :  { %2620 = vsyncpa [#allocation5 + $0x1], 1 }
 0x256   :  { %2621 = vsyncpa [#allocation8], 1 }
 0x257   :  { %2623 = vsyncpa [#allocation8 + $0x1], 1 }
 0x258   :  { %2624 = vsyncpa [#allocation6], 1 }
 0x259   :  { %2626 = vsyncpa [#allocation6 + $0x1], 1 }

</bundles_post_ra>
